<compile_context>
chip_gen: v5e
topology: v5e:2x2
jax: 0.10.0
libtpu: 0.0.40
codegen_flags: <defaults>
</compile_context>

<pallas_src>
import functools

import jax
import jax.numpy as jnp
from jax import lax
from jax.experimental import pallas as pl
from jax.experimental.pallas import tpu as pltpu

LANE = 128
SUBLANE = 8


def _round_up(n, m):
    return ((n + m - 1) // m) * m


# ----------------------------------------------------------------------------
# Fused Pallas kernel: LSTM stack + (BN-folded) MLP head + softmax
# ----------------------------------------------------------------------------
def fused_forward_kernel(*refs, seq_len, tile_b, num_layers, gate_stride):
    """refs = x, [wih, whh, bias]*L, w1, b1, w2, b2, w3, b3, out, xg, hseq.

    x:    (T, TB, D) bf16      one batch tile, time-major
    wih:  (Din, 4*GS) bf16     input->gate weights, gates packed [i|f|g|o]
    whh:  (GS, 4*GS) f32       hidden->gate weights (rows >= H are zero)
    bias: (1, 4*GS) f32        b_ih + b_hh, packed (padding is zero)
    w*/b*: head, 128-lane padded; BN folded into fc1; padded fc3 bias = -1e30
    out:  (TB, OUTP) f32       padded class probabilities (lane-dense store)
    xg:   VMEM (T*TB, 4*GS) f32  hoisted input projection scratch
    hseq: VMEM (T*TB, GS) bf16   inter-layer hidden-sequence scratch
    """
    T, TB, GS = seq_len, tile_b, gate_stride
    n_in = 1 + 3 * num_layers + 6
    x_ref = refs[0]
    lstm_refs = refs[1:1 + 3 * num_layers]
    w1_ref, b1_ref, w2_ref, b2_ref, w3_ref, b3_ref = refs[1 + 3 * num_layers:n_in]
    out_ref = refs[n_in]
    xg_ref = refs[n_in + 1]
    hseq_ref = refs[n_in + 2]

    h = None
    for layer in range(num_layers):
        wih = lstm_refs[3 * layer][...]        # (Din, 4*GS) bf16
        whh = lstm_refs[3 * layer + 1][...]    # (GS, 4*GS)  f32
        bias = lstm_refs[3 * layer + 2][...]   # (1, 4*GS)   f32
        last_layer = layer == num_layers - 1

        # Hoisted input projection for ALL timesteps (bf16 MXU, f32 accumulate),
        # landed in VMEM scratch so only one (TB, 4*GS) slab is live per step.
        if layer == 0:
            for t in range(T):
                xg_ref[pl.ds(t * TB, TB), :] = jnp.dot(
                    x_ref[t], wih, preferred_element_type=jnp.float32)
        else:
            xg_ref[...] = jnp.dot(
                hseq_ref[...], wih, preferred_element_type=jnp.float32)

        h = jnp.zeros((TB, GS), jnp.float32)
        c = jnp.zeros((TB, GS), jnp.float32)
        # TODO(synk): for long sequences switch this static unroll to pl.loop.
        for t in range(T):
            gates = (xg_ref[pl.ds(t * TB, TB), :]
                     + jnp.dot(h, whh, preferred_element_type=jnp.float32)
                     + bias)                                # (TB, 4*GS)  packed i|f|g|o
            sg = jax.nn.sigmoid(gates)                      # one packed EUP pass
            tg = jnp.tanh(gates)                            # one packed EUP pass
            i_g = sg[:, 0 * GS:1 * GS]
            f_g = sg[:, 1 * GS:2 * GS]
            o_g = sg[:, 3 * GS:4 * GS]
            g_g = tg[:, 2 * GS:3 * GS]
            c = f_g * c + i_g * g_g
            h = o_g * jnp.tanh(c)
            if not last_layer:
                # Inter-layer dropout is identity in eval mode.
                hseq_ref[pl.ds(t * TB, TB), :] = h.astype(hseq_ref.dtype)

    # ---- head: BN (eval) pre-folded into fc1; dropout = identity ----
    z = jnp.dot(h, w1_ref[...], preferred_element_type=jnp.float32) + b1_ref[...]
    z = jnp.maximum(z, 0.0)
    z = jnp.dot(z, w2_ref[...], preferred_element_type=jnp.float32) + b2_ref[...]
    z = jnp.maximum(z, 0.0)
    logits = jnp.dot(z, w3_ref[...], preferred_element_type=jnp.float32) + b3_ref[...]

    # softmax over the lane axis; padded logit lanes carry a -1e30 bias -> exp ~ 0.
    m = jnp.max(logits, axis=1, keepdims=True)
    e = jnp.exp(logits - m)
    out_ref[...] = e / jnp.sum(e, axis=1, keepdims=True)


# ----------------------------------------------------------------------------
# Wrapper
# ----------------------------------------------------------------------------
@functools.partial(jax.jit, static_argnames=("output_size",))
def fall_detection_lstm_forward(x, kparams, output_size):
    """x: (batch, seq, input_size) -> (batch, output_size) probabilities."""
    B, T, D = x.shape
    TB = 256 if B >= 256 else _round_up(B, SUBLANE)   # batch tile per grid step
    Bp = _round_up(B, TB)

    # time-major, single pad op, bf16 for the hoisted projection matmul
    xt = jnp.transpose(x, (1, 0, 2)).astype(jnp.bfloat16)   # (T, B, D)
    if Bp != B:
        xt = jnp.pad(xt, ((0, 0), (0, Bp - B), (0, 0)))     # (T, Bp, D)

    lstm, head = kparams["lstm"], kparams["head"]
    num_layers = len(lstm)
    GS = lstm[0]["whh"].shape[0]
    WG = 4 * GS
    OUTP = head["b3"].shape[1]

    args = [xt]
    for layer in lstm:
        args += [layer["wih"], layer["whh"], layer["bias"]]
    args += [head["w1"], head["b1"], head["w2"], head["b2"], head["w3"], head["b3"]]

    def resident(shape):
        n = len(shape)
        return pl.BlockSpec(shape, lambda i: (0,) * n)       # fetched once, stays in VMEM

    in_specs = [pl.BlockSpec((T, TB, D), lambda i: (0, i, 0))]
    in_specs += [resident(a.shape) for a in args[1:]]
    out_spec = pl.BlockSpec((TB, OUTP), lambda i: (i, 0))

    # advisory cost estimate so XLA schedules surrounding ops around the call
    flops, trans, d_in = 0, 0, D
    for _ in range(num_layers):
        flops += 2 * T * Bp * d_in * WG + 2 * T * Bp * GS * WG + 10 * T * Bp * GS
        trans += T * Bp * (2 * WG + GS)
        d_in = GS
    p1, p2 = head["w1"].shape[1], head["w2"].shape[1]
    flops += 2 * Bp * (GS * p1 + p1 * p2 + p2 * OUTP)
    trans += Bp * OUTP
    bytes_accessed = sum(int(a.size) * a.dtype.itemsize for a in args) + Bp * OUTP * 4

    kernel = functools.partial(
        fused_forward_kernel, seq_len=T, tile_b=TB,
        num_layers=num_layers, gate_stride=GS)

    probs_pad = pl.pallas_call(
        kernel,
        out_shape=jax.ShapeDtypeStruct((Bp, OUTP), jnp.float32),
        grid=(Bp // TB,),
        in_specs=in_specs,
        out_specs=out_spec,
        scratch_shapes=[pltpu.VMEM((T * TB, WG), jnp.float32),
                        pltpu.VMEM((T * TB, GS), jnp.bfloat16)],
        compiler_params=pltpu.CompilerParams(
            dimension_semantics=("parallel",)),
        cost_estimate=pl.CostEstimate(
            flops=int(flops), transcendentals=int(trans),
            bytes_accessed=int(bytes_accessed)),
    )(*args)
    return probs_pad[:B, :output_size]


# ----------------------------------------------------------------------------
# Parameters: PyTorch-style raw init + kernel-layout preparation
# ----------------------------------------------------------------------------
def init_raw_params(key, input_size, hidden_size, num_layers, output_size):
    """Mirrors FallDetectionLSTM._init_weights (PyTorch shapes / eval stats)."""
    H = hidden_size
    lstm = []
    for l in range(num_layers):
        d_in = input_size if l == 0 else H
        key, k1, k2 = jax.random.split(key, 3)
        # xavier_uniform for W_ih (4H, d_in)
        limit = jnp.sqrt(6.0 / (4 * H + d_in))
        w_ih = jax.random.uniform(k1, (4 * H, d_in), jnp.float32, -limit, limit)
        # orthogonal for W_hh (4H, H)
        a = jax.random.normal(k2, (4 * H, H), jnp.float32)
        q, r = jnp.linalg.qr(a)
        w_hh = q * jnp.sign(jnp.diag(r))[None, :]
        # biases initialised to zero; store combined b_ih + b_hh
        lstm.append({"w_ih": w_ih, "w_hh": w_hh, "b": jnp.zeros((4 * H,), jnp.float32)})

    bn = {
        "gamma": jnp.ones((H,), jnp.float32),
        "beta": jnp.zeros((H,), jnp.float32),
        "running_mean": jnp.zeros((H,), jnp.float32),
        "running_var": jnp.ones((H,), jnp.float32),
    }

    def kaiming(k, fan_out, fan_in):
        std = jnp.sqrt(2.0 / fan_in)
        return jax.random.normal(k, (fan_out, fan_in), jnp.float32) * std

    key, k1, k2, k3 = jax.random.split(key, 4)
    fc = {
        "w1": kaiming(k1, H // 2, H), "b1": jnp.full((H // 2,), 0.01, jnp.float32),
        "w2": kaiming(k2, H // 4, H // 2), "b2": jnp.full((H // 4,), 0.01, jnp.float32),
        "w3": kaiming(k3, output_size, H // 4), "b3": jnp.full((output_size,), 0.01, jnp.float32),
    }
    return {"lstm": lstm, "bn": bn, "fc": fc}


def prepare_kernel_params(raw, input_size, hidden_size, output_size):
    """Pack gates into one 4*GS lane group, fold eval-mode BN into fc1, pad head."""
    H = hidden_size
    GS = _round_up(H, 32)          # gate slot stride; 4*GS is a multiple of 128
    WG = 4 * GS
    lstm = []
    for l, layer in enumerate(raw["lstm"]):
        d_in = input_size if l == 0 else H
        rows = input_size if l == 0 else GS
        wih = jnp.zeros((rows, WG), jnp.float32)
        whh = jnp.zeros((GS, WG), jnp.float32)
        bias = jnp.zeros((1, WG), jnp.float32)
        for g in range(4):          # PyTorch gate order: i, f, g, o
            wih = wih.at[:d_in, g * GS:g * GS + H].set(layer["w_ih"][g * H:(g + 1) * H, :].T)
            whh = whh.at[:H, g * GS:g * GS + H].set(layer["w_hh"][g * H:(g + 1) * H, :].T)
            bias = bias.at[0, g * GS:g * GS + H].set(layer["b"][g * H:(g + 1) * H])
        lstm.append({"wih": wih.astype(jnp.bfloat16), "whh": whh, "bias": bias})

    # Fold BatchNorm1d (eval, running stats) into fc1.
    eps = 1e-5
    bn, fc = raw["bn"], raw["fc"]
    s = bn["gamma"] * lax.rsqrt(bn["running_var"] + eps)        # (H,)
    shift = bn["beta"] - bn["running_mean"] * s                 # (H,)
    w1_t = fc["w1"].T                                           # (H, H//2)
    w1_fold = s[:, None] * w1_t
    b1_fold = fc["b1"] + shift @ w1_t

    H2, H4 = H // 2, H // 4
    P1, P2 = _round_up(H2, LANE), _round_up(H4, LANE)
    PO = _round_up(output_size, LANE)

    def pad2(w, rp, cp):
        return jnp.zeros((rp, cp), jnp.float32).at[:w.shape[0], :w.shape[1]].set(w)

    head = {
        "w1": pad2(w1_fold, GS, P1),
        "b1": jnp.zeros((1, P1), jnp.float32).at[0, :H2].set(b1_fold),
        "w2": pad2(fc["w2"].T, P1, P2),
        "b2": jnp.zeros((1, P2), jnp.float32).at[0, :H4].set(fc["b2"]),
        "w3": pad2(fc["w3"].T, P2, PO),
        # padded logit columns get a huge negative bias so softmax ignores them
        "b3": jnp.full((1, PO), -1e30, jnp.float32).at[0, :output_size].set(fc["b3"]),
    }
    return {"lstm": lstm, "head": head}


# ----------------------------------------------------------------------------
# Pure-JAX reference (PyTorch eval semantics) for correctness checking
# ----------------------------------------------------------------------------
def reference_forward(x, raw, hidden_size):
    B, T, _ = x.shape
    H = hidden_size
    out = x.astype(jnp.float32)
    for layer in raw["lstm"]:
        w_ih, w_hh, b = layer["w_ih"], layer["w_hh"], layer["b"]

        def step(carry, x_t):
            h, c = carry
            gates = x_t @ w_ih.T + h @ w_hh.T + b
            i = jax.nn.sigmoid(gates[:, 0 * H:1 * H])
            f = jax.nn.sigmoid(gates[:, 1 * H:2 * H])
            g = jnp.tanh(gates[:, 2 * H:3 * H])
            o = jax.nn.sigmoid(gates[:, 3 * H:4 * H])
            c = f * c + i * g
            h = o * jnp.tanh(c)
            return (h, c), h

        h0 = jnp.zeros((B, H), jnp.float32)
        (_, _), hseq = lax.scan(step, (h0, h0), jnp.transpose(out, (1, 0, 2)))
        out = jnp.transpose(hseq, (1, 0, 2))
    last = out[:, -1, :]
    eps = 1e-5
    bn, fc = raw["bn"], raw["fc"]
    z = (last - bn["running_mean"]) * lax.rsqrt(bn["running_var"] + eps)
    z = z * bn["gamma"] + bn["beta"]
    z = jnp.maximum(z @ fc["w1"].T + fc["b1"], 0.0)
    z = jnp.maximum(z @ fc["w2"].T + fc["b2"], 0.0)
    logits = z @ fc["w3"].T + fc["b3"]
    return jax.nn.softmax(logits, axis=1)


# ----------------------------------------------------------------------------
# Main
# ----------------------------------------------------------------------------
if __name__ == "__main__":
    batch, seq, input_size = 4, 8, 16
    hidden_size, num_layers, output_size = 32, 2, 3

    key = jax.random.PRNGKey(0)
    key, kx, kp = jax.random.split(key, 3)
    x = jax.random.normal(kx, (batch, seq, input_size), jnp.float32)

    raw = init_raw_params(kp, input_size, hidden_size, num_layers, output_size)
    kparams = prepare_kernel_params(raw, input_size, hidden_size, output_size)

    probs = fall_detection_lstm_forward(x, kparams, output_size=output_size)
    probs = jax.block_until_ready(probs)

    assert probs.shape == (batch, output_size)
    assert bool(jnp.all(jnp.isfinite(probs)))
    # rows of a softmax sum to 1 (exact divide in-kernel)
    assert bool(jnp.allclose(jnp.sum(probs, axis=1), 1.0, atol=1e-3))

    ref = reference_forward(x, raw, hidden_size)
    assert bool(jnp.allclose(probs, ref, atol=2e-2, rtol=2e-2))

    print("KERNEL_OK")
</pallas_src>

<mosaic_0001>
module attributes {stable_mosaic.version = 11 : i64} {
  func.func @fused_forward_kernel(%arg0: i32, %arg1: memref<8x8x16xbf16, #tpu.memory_space<vmem>>, %arg2: memref<16x128xbf16, #tpu.memory_space<vmem>>, %arg3: memref<32x128xf32, #tpu.memory_space<vmem>>, %arg4: memref<1x128xf32, #tpu.memory_space<vmem>>, %arg5: memref<32x128xbf16, #tpu.memory_space<vmem>>, %arg6: memref<32x128xf32, #tpu.memory_space<vmem>>, %arg7: memref<1x128xf32, #tpu.memory_space<vmem>>, %arg8: memref<32x128xf32, #tpu.memory_space<vmem>>, %arg9: memref<1x128xf32, #tpu.memory_space<vmem>>, %arg10: memref<128x128xf32, #tpu.memory_space<vmem>>, %arg11: memref<1x128xf32, #tpu.memory_space<vmem>>, %arg12: memref<128x128xf32, #tpu.memory_space<vmem>>, %arg13: memref<1x128xf32, #tpu.memory_space<vmem>>, %arg14: memref<8x128xf32, #tpu.memory_space<vmem>>, %arg15: memref<64x128xf32, #tpu.memory_space<vmem>>, %arg16: memref<64x32xbf16, #tpu.memory_space<vmem>>) attributes {dimension_semantics = [#tpu.dimension_semantics<parallel>], iteration_bounds = array<i64: 1>, scalar_prefetch = 0 : i64, scratch_operands = 2 : i64, tpu.core_type = #tpu.core_type<tc>, window_params = [{transform_indices = @transform_0, window_bounds = array<i64: 8, 8, 16>}, {pipeline_mode = #tpu.pipeline_mode<synchronous>, transform_indices = @transform_1, window_bounds = array<i64: 16, 128>}, {pipeline_mode = #tpu.pipeline_mode<synchronous>, transform_indices = @transform_2, window_bounds = array<i64: 32, 128>}, {pipeline_mode = #tpu.pipeline_mode<synchronous>, transform_indices = @transform_3, window_bounds = array<i64: 1, 128>}, {pipeline_mode = #tpu.pipeline_mode<synchronous>, transform_indices = @transform_4, window_bounds = array<i64: 32, 128>}, {pipeline_mode = #tpu.pipeline_mode<synchronous>, transform_indices = @transform_5, window_bounds = array<i64: 32, 128>}, {pipeline_mode = #tpu.pipeline_mode<synchronous>, transform_indices = @transform_6, window_bounds = array<i64: 1, 128>}, {pipeline_mode = #tpu.pipeline_mode<synchronous>, transform_indices = @transform_7, window_bounds = array<i64: 32, 128>}, {pipeline_mode = #tpu.pipeline_mode<synchronous>, transform_indices = @transform_8, window_bounds = array<i64: 1, 128>}, {pipeline_mode = #tpu.pipeline_mode<synchronous>, transform_indices = @transform_9, window_bounds = array<i64: 128, 128>}, {pipeline_mode = #tpu.pipeline_mode<synchronous>, transform_indices = @transform_10, window_bounds = array<i64: 1, 128>}, {pipeline_mode = #tpu.pipeline_mode<synchronous>, transform_indices = @transform_11, window_bounds = array<i64: 128, 128>}, {pipeline_mode = #tpu.pipeline_mode<synchronous>, transform_indices = @transform_12, window_bounds = array<i64: 1, 128>}, {transform_indices = @transform_13, window_bounds = array<i64: 8, 128>}]} {
    %c0 = arith.constant 0 : index
    %c0_0 = arith.constant 0 : index
    %0 = vector.load %arg2[%c0, %c0_0] : memref<16x128xbf16, #tpu.memory_space<vmem>>, vector<16x128xbf16>
    %c0_1 = arith.constant 0 : index
    %c0_2 = arith.constant 0 : index
    %1 = vector.load %arg3[%c0_1, %c0_2] : memref<32x128xf32, #tpu.memory_space<vmem>>, vector<32x128xf32>
    %c0_3 = arith.constant 0 : index
    %c0_4 = arith.constant 0 : index
    %2 = vector.load %arg4[%c0_3, %c0_4] : memref<1x128xf32, #tpu.memory_space<vmem>>, vector<1x128xf32>
    %c0_5 = arith.constant 0 : index
    %c0_6 = arith.constant 0 : index
    %c0_7 = arith.constant 0 : index
    %3 = vector.load %arg1[%c0_5, %c0_6, %c0_7] : memref<8x8x16xbf16, #tpu.memory_space<vmem>>, vector<1x8x16xbf16>
    %4 = vector.shape_cast %3 : vector<1x8x16xbf16> to vector<8x16xbf16>
    %cst = arith.constant dense<0.000000e+00> : vector<8x128xf32>
    %5 = tpu.matmul %4, %0, %cst {dimension_numbers = #tpu.dot_dimension_numbers<[1], [0], [0], [1], [0, 0, 1, 1], [], []>} : vector<8x16xbf16>, vector<16x128xbf16>, vector<8x128xf32> -> vector<8x128xf32>
    %c0_8 = arith.constant 0 : index
    %c0_9 = arith.constant 0 : index
    %6 = vector.load %arg15[%c0_8, %c0_9] : memref<64x128xf32, #tpu.memory_space<vmem>>, vector<8x128xf32>
    tpu.vector_store %arg15[%c0_8, %c0_9], %5 {strides = array<i32>} : memref<64x128xf32, #tpu.memory_space<vmem>>, vector<8x128xf32>,
    %c1 = arith.constant 1 : index
    %c0_10 = arith.constant 0 : index
    %c0_11 = arith.constant 0 : index
    %7 = vector.load %arg1[%c1, %c0_10, %c0_11] : memref<8x8x16xbf16, #tpu.memory_space<vmem>>, vector<1x8x16xbf16>
    %8 = vector.shape_cast %7 : vector<1x8x16xbf16> to vector<8x16xbf16>
    %cst_12 = arith.constant dense<0.000000e+00> : vector<8x128xf32>
    %9 = tpu.matmul %8, %0, %cst_12 {dimension_numbers = #tpu.dot_dimension_numbers<[1], [0], [0], [1], [0, 0, 1, 1], [], []>} : vector<8x16xbf16>, vector<16x128xbf16>, vector<8x128xf32> -> vector<8x128xf32>
    %c8 = arith.constant 8 : index
    %c0_13 = arith.constant 0 : index
    %10 = vector.load %arg15[%c8, %c0_13] : memref<64x128xf32, #tpu.memory_space<vmem>>, vector<8x128xf32>
    tpu.vector_store %arg15[%c8, %c0_13], %9 {strides = array<i32>} : memref<64x128xf32, #tpu.memory_space<vmem>>, vector<8x128xf32>,
    %c2 = arith.constant 2 : index
    %c0_14 = arith.constant 0 : index
    %c0_15 = arith.constant 0 : index
    %11 = vector.load %arg1[%c2, %c0_14, %c0_15] : memref<8x8x16xbf16, #tpu.memory_space<vmem>>, vector<1x8x16xbf16>
    %12 = vector.shape_cast %11 : vector<1x8x16xbf16> to vector<8x16xbf16>
    %cst_16 = arith.constant dense<0.000000e+00> : vector<8x128xf32>
    %13 = tpu.matmul %12, %0, %cst_16 {dimension_numbers = #tpu.dot_dimension_numbers<[1], [0], [0], [1], [0, 0, 1, 1], [], []>} : vector<8x16xbf16>, vector<16x128xbf16>, vector<8x128xf32> -> vector<8x128xf32>
    %c16 = arith.constant 16 : index
    %c0_17 = arith.constant 0 : index
    %14 = vector.load %arg15[%c16, %c0_17] : memref<64x128xf32, #tpu.memory_space<vmem>>, vector<8x128xf32>
    tpu.vector_store %arg15[%c16, %c0_17], %13 {strides = array<i32>} : memref<64x128xf32, #tpu.memory_space<vmem>>, vector<8x128xf32>,
    %c3 = arith.constant 3 : index
    %c0_18 = arith.constant 0 : index
    %c0_19 = arith.constant 0 : index
    %15 = vector.load %arg1[%c3, %c0_18, %c0_19] : memref<8x8x16xbf16, #tpu.memory_space<vmem>>, vector<1x8x16xbf16>
    %16 = vector.shape_cast %15 : vector<1x8x16xbf16> to vector<8x16xbf16>
    %cst_20 = arith.constant dense<0.000000e+00> : vector<8x128xf32>
    %17 = tpu.matmul %16, %0, %cst_20 {dimension_numbers = #tpu.dot_dimension_numbers<[1], [0], [0], [1], [0, 0, 1, 1], [], []>} : vector<8x16xbf16>, vector<16x128xbf16>, vector<8x128xf32> -> vector<8x128xf32>
    %c24 = arith.constant 24 : index
    %c0_21 = arith.constant 0 : index
    %18 = vector.load %arg15[%c24, %c0_21] : memref<64x128xf32, #tpu.memory_space<vmem>>, vector<8x128xf32>
    tpu.vector_store %arg15[%c24, %c0_21], %17 {strides = array<i32>} : memref<64x128xf32, #tpu.memory_space<vmem>>, vector<8x128xf32>,
    %c4 = arith.constant 4 : index
    %c0_22 = arith.constant 0 : index
    %c0_23 = arith.constant 0 : index
    %19 = vector.load %arg1[%c4, %c0_22, %c0_23] : memref<8x8x16xbf16, #tpu.memory_space<vmem>>, vector<1x8x16xbf16>
    %20 = vector.shape_cast %19 : vector<1x8x16xbf16> to vector<8x16xbf16>
    %cst_24 = arith.constant dense<0.000000e+00> : vector<8x128xf32>
    %21 = tpu.matmul %20, %0, %cst_24 {dimension_numbers = #tpu.dot_dimension_numbers<[1], [0], [0], [1], [0, 0, 1, 1], [], []>} : vector<8x16xbf16>, vector<16x128xbf16>, vector<8x128xf32> -> vector<8x128xf32>
    %c32 = arith.constant 32 : index
    %c0_25 = arith.constant 0 : index
    %22 = vector.load %arg15[%c32, %c0_25] : memref<64x128xf32, #tpu.memory_space<vmem>>, vector<8x128xf32>
    tpu.vector_store %arg15[%c32, %c0_25], %21 {strides = array<i32>} : memref<64x128xf32, #tpu.memory_space<vmem>>, vector<8x128xf32>,
    %c5 = arith.constant 5 : index
    %c0_26 = arith.constant 0 : index
    %c0_27 = arith.constant 0 : index
    %23 = vector.load %arg1[%c5, %c0_26, %c0_27] : memref<8x8x16xbf16, #tpu.memory_space<vmem>>, vector<1x8x16xbf16>
    %24 = vector.shape_cast %23 : vector<1x8x16xbf16> to vector<8x16xbf16>
    %cst_28 = arith.constant dense<0.000000e+00> : vector<8x128xf32>
    %25 = tpu.matmul %24, %0, %cst_28 {dimension_numbers = #tpu.dot_dimension_numbers<[1], [0], [0], [1], [0, 0, 1, 1], [], []>} : vector<8x16xbf16>, vector<16x128xbf16>, vector<8x128xf32> -> vector<8x128xf32>
    %c40 = arith.constant 40 : index
    %c0_29 = arith.constant 0 : index
    %26 = vector.load %arg15[%c40, %c0_29] : memref<64x128xf32, #tpu.memory_space<vmem>>, vector<8x128xf32>
    tpu.vector_store %arg15[%c40, %c0_29], %25 {strides = array<i32>} : memref<64x128xf32, #tpu.memory_space<vmem>>, vector<8x128xf32>,
    %c6 = arith.constant 6 : index
    %c0_30 = arith.constant 0 : index
    %c0_31 = arith.constant 0 : index
    %27 = vector.load %arg1[%c6, %c0_30, %c0_31] : memref<8x8x16xbf16, #tpu.memory_space<vmem>>, vector<1x8x16xbf16>
    %28 = vector.shape_cast %27 : vector<1x8x16xbf16> to vector<8x16xbf16>
    %cst_32 = arith.constant dense<0.000000e+00> : vector<8x128xf32>
    %29 = tpu.matmul %28, %0, %cst_32 {dimension_numbers = #tpu.dot_dimension_numbers<[1], [0], [0], [1], [0, 0, 1, 1], [], []>} : vector<8x16xbf16>, vector<16x128xbf16>, vector<8x128xf32> -> vector<8x128xf32>
    %c48 = arith.constant 48 : index
    %c0_33 = arith.constant 0 : index
    %30 = vector.load %arg15[%c48, %c0_33] : memref<64x128xf32, #tpu.memory_space<vmem>>, vector<8x128xf32>
    tpu.vector_store %arg15[%c48, %c0_33], %29 {strides = array<i32>} : memref<64x128xf32, #tpu.memory_space<vmem>>, vector<8x128xf32>,
    %c7 = arith.constant 7 : index
    %c0_34 = arith.constant 0 : index
    %c0_35 = arith.constant 0 : index
    %31 = vector.load %arg1[%c7, %c0_34, %c0_35] : memref<8x8x16xbf16, #tpu.memory_space<vmem>>, vector<1x8x16xbf16>
    %32 = vector.shape_cast %31 : vector<1x8x16xbf16> to vector<8x16xbf16>
    %cst_36 = arith.constant dense<0.000000e+00> : vector<8x128xf32>
    %33 = tpu.matmul %32, %0, %cst_36 {dimension_numbers = #tpu.dot_dimension_numbers<[1], [0], [0], [1], [0, 0, 1, 1], [], []>} : vector<8x16xbf16>, vector<16x128xbf16>, vector<8x128xf32> -> vector<8x128xf32>
    %c56 = arith.constant 56 : index
    %c0_37 = arith.constant 0 : index
    %34 = vector.load %arg15[%c56, %c0_37] : memref<64x128xf32, #tpu.memory_space<vmem>>, vector<8x128xf32>
    tpu.vector_store %arg15[%c56, %c0_37], %33 {strides = array<i32>} : memref<64x128xf32, #tpu.memory_space<vmem>>, vector<8x128xf32>,
    %cst_38 = arith.constant 0.000000e+00 : f32
    %35 = vector.broadcast %cst_38 : f32 to vector<8x32xf32>
    %cst_39 = arith.constant 0.000000e+00 : f32
    %36 = vector.broadcast %cst_39 : f32 to vector<8x32xf32>
    %c0_40 = arith.constant 0 : index
    %c0_41 = arith.constant 0 : index
    %37 = vector.load %arg15[%c0_40, %c0_41] : memref<64x128xf32, #tpu.memory_space<vmem>>, vector<8x128xf32>
    %cst_42 = arith.constant dense<0.000000e+00> : vector<8x128xf32>
    %38 = tpu.matmul %35, %1, %cst_42 {dimension_numbers = #tpu.dot_dimension_numbers<[1], [0], [0], [1], [0, 0, 1, 1], [], []>} : vector<8x32xf32>, vector<32x128xf32>, vector<8x128xf32> -> vector<8x128xf32>
    %39 = arith.addf %37, %38 : vector<8x128xf32>
    %40 = vector.broadcast %2 : vector<1x128xf32> to vector<8x128xf32>
    %41 = arith.addf %39, %40 : vector<8x128xf32>
    %42 = arith.negf %41 : vector<8x128xf32>
    %43 = math.exp %42 : vector<8x128xf32>
    %cst_43 = arith.constant 1.000000e+00 : f32
    %44 = vector.broadcast %cst_43 : f32 to vector<8x128xf32>
    %45 = arith.addf %44, %43 : vector<8x128xf32>
    %46 = arith.divf %44, %45 : vector<8x128xf32>
    %47 = math.tanh %41 : vector<8x128xf32>
    %48 = vector.extract_strided_slice %46 {offsets = [0, 0], sizes = [8, 32], strides = [1, 1]} : vector<8x128xf32> to vector<8x32xf32>
    %49 = vector.extract_strided_slice %46 {offsets = [0, 32], sizes = [8, 32], strides = [1, 1]} : vector<8x128xf32> to vector<8x32xf32>
    %50 = vector.extract_strided_slice %46 {offsets = [0, 96], sizes = [8, 32], strides = [1, 1]} : vector<8x128xf32> to vector<8x32xf32>
    %51 = vector.extract_strided_slice %47 {offsets = [0, 64], sizes = [8, 32], strides = [1, 1]} : vector<8x128xf32> to vector<8x32xf32>
    %52 = arith.mulf %49, %36 : vector<8x32xf32>
    %53 = arith.mulf %48, %51 : vector<8x32xf32>
    %54 = arith.addf %52, %53 : vector<8x32xf32>
    %55 = math.tanh %54 : vector<8x32xf32>
    %56 = arith.mulf %50, %55 : vector<8x32xf32>
    %57 = arith.truncf %56 : vector<8x32xf32> to vector<8x32xbf16>
    %c0_44 = arith.constant 0 : index
    %c0_45 = arith.constant 0 : index
    %58 = vector.load %arg16[%c0_44, %c0_45] : memref<64x32xbf16, #tpu.memory_space<vmem>>, vector<8x32xbf16>
    tpu.vector_store %arg16[%c0_44, %c0_45], %57 {strides = array<i32>} : memref<64x32xbf16, #tpu.memory_space<vmem>>, vector<8x32xbf16>,
    %c8_46 = arith.constant 8 : index
    %c0_47 = arith.constant 0 : index
    %59 = vector.load %arg15[%c8_46, %c0_47] : memref<64x128xf32, #tpu.memory_space<vmem>>, vector<8x128xf32>
    %cst_48 = arith.constant dense<0.000000e+00> : vector<8x128xf32>
    %60 = tpu.matmul %56, %1, %cst_48 {dimension_numbers = #tpu.dot_dimension_numbers<[1], [0], [0], [1], [0, 0, 1, 1], [], []>} : vector<8x32xf32>, vector<32x128xf32>, vector<8x128xf32> -> vector<8x128xf32>
    %61 = arith.addf %59, %60 : vector<8x128xf32>
    %62 = vector.broadcast %2 : vector<1x128xf32> to vector<8x128xf32>
    %63 = arith.addf %61, %62 : vector<8x128xf32>
    %64 = arith.negf %63 : vector<8x128xf32>
    %65 = math.exp %64 : vector<8x128xf32>
    %cst_49 = arith.constant 1.000000e+00 : f32
    %66 = vector.broadcast %cst_49 : f32 to vector<8x128xf32>
    %67 = arith.addf %66, %65 : vector<8x128xf32>
    %68 = arith.divf %66, %67 : vector<8x128xf32>
    %69 = math.tanh %63 : vector<8x128xf32>
    %70 = vector.extract_strided_slice %68 {offsets = [0, 0], sizes = [8, 32], strides = [1, 1]} : vector<8x128xf32> to vector<8x32xf32>
    %71 = vector.extract_strided_slice %68 {offsets = [0, 32], sizes = [8, 32], strides = [1, 1]} : vector<8x128xf32> to vector<8x32xf32>
    %72 = vector.extract_strided_slice %68 {offsets = [0, 96], sizes = [8, 32], strides = [1, 1]} : vector<8x128xf32> to vector<8x32xf32>
    %73 = vector.extract_strided_slice %69 {offsets = [0, 64], sizes = [8, 32], strides = [1, 1]} : vector<8x128xf32> to vector<8x32xf32>
    %74 = arith.mulf %71, %54 : vector<8x32xf32>
    %75 = arith.mulf %70, %73 : vector<8x32xf32>
    %76 = arith.addf %74, %75 : vector<8x32xf32>
    %77 = math.tanh %76 : vector<8x32xf32>
    %78 = arith.mulf %72, %77 : vector<8x32xf32>
    %79 = arith.truncf %78 : vector<8x32xf32> to vector<8x32xbf16>
    %c8_50 = arith.constant 8 : index
    %c0_51 = arith.constant 0 : index
    %80 = vector.load %arg16[%c8_50, %c0_51] : memref<64x32xbf16, #tpu.memory_space<vmem>>, vector<8x32xbf16>
    tpu.vector_store %arg16[%c8_50, %c0_51], %79 {strides = array<i32>} : memref<64x32xbf16, #tpu.memory_space<vmem>>, vector<8x32xbf16>,
    %c16_52 = arith.constant 16 : index
    %c0_53 = arith.constant 0 : index
    %81 = vector.load %arg15[%c16_52, %c0_53] : memref<64x128xf32, #tpu.memory_space<vmem>>, vector<8x128xf32>
    %cst_54 = arith.constant dense<0.000000e+00> : vector<8x128xf32>
    %82 = tpu.matmul %78, %1, %cst_54 {dimension_numbers = #tpu.dot_dimension_numbers<[1], [0], [0], [1], [0, 0, 1, 1], [], []>} : vector<8x32xf32>, vector<32x128xf32>, vector<8x128xf32> -> vector<8x128xf32>
    %83 = arith.addf %81, %82 : vector<8x128xf32>
    %84 = vector.broadcast %2 : vector<1x128xf32> to vector<8x128xf32>
    %85 = arith.addf %83, %84 : vector<8x128xf32>
    %86 = arith.negf %85 : vector<8x128xf32>
    %87 = math.exp %86 : vector<8x128xf32>
    %cst_55 = arith.constant 1.000000e+00 : f32
    %88 = vector.broadcast %cst_55 : f32 to vector<8x128xf32>
    %89 = arith.addf %88, %87 : vector<8x128xf32>
    %90 = arith.divf %88, %89 : vector<8x128xf32>
    %91 = math.tanh %85 : vector<8x128xf32>
    %92 = vector.extract_strided_slice %90 {offsets = [0, 0], sizes = [8, 32], strides = [1, 1]} : vector<8x128xf32> to vector<8x32xf32>
    %93 = vector.extract_strided_slice %90 {offsets = [0, 32], sizes = [8, 32], strides = [1, 1]} : vector<8x128xf32> to vector<8x32xf32>
    %94 = vector.extract_strided_slice %90 {offsets = [0, 96], sizes = [8, 32], strides = [1, 1]} : vector<8x128xf32> to vector<8x32xf32>
    %95 = vector.extract_strided_slice %91 {offsets = [0, 64], sizes = [8, 32], strides = [1, 1]} : vector<8x128xf32> to vector<8x32xf32>
    %96 = arith.mulf %93, %76 : vector<8x32xf32>
    %97 = arith.mulf %92, %95 : vector<8x32xf32>
    %98 = arith.addf %96, %97 : vector<8x32xf32>
    %99 = math.tanh %98 : vector<8x32xf32>
    %100 = arith.mulf %94, %99 : vector<8x32xf32>
    %101 = arith.truncf %100 : vector<8x32xf32> to vector<8x32xbf16>
    %c16_56 = arith.constant 16 : index
    %c0_57 = arith.constant 0 : index
    %102 = vector.load %arg16[%c16_56, %c0_57] : memref<64x32xbf16, #tpu.memory_space<vmem>>, vector<8x32xbf16>
    tpu.vector_store %arg16[%c16_56, %c0_57], %101 {strides = array<i32>} : memref<64x32xbf16, #tpu.memory_space<vmem>>, vector<8x32xbf16>,
    %c24_58 = arith.constant 24 : index
    %c0_59 = arith.constant 0 : index
    %103 = vector.load %arg15[%c24_58, %c0_59] : memref<64x128xf32, #tpu.memory_space<vmem>>, vector<8x128xf32>
    %cst_60 = arith.constant dense<0.000000e+00> : vector<8x128xf32>
    %104 = tpu.matmul %100, %1, %cst_60 {dimension_numbers = #tpu.dot_dimension_numbers<[1], [0], [0], [1], [0, 0, 1, 1], [], []>} : vector<8x32xf32>, vector<32x128xf32>, vector<8x128xf32> -> vector<8x128xf32>
    %105 = arith.addf %103, %104 : vector<8x128xf32>
    %106 = vector.broadcast %2 : vector<1x128xf32> to vector<8x128xf32>
    %107 = arith.addf %105, %106 : vector<8x128xf32>
    %108 = arith.negf %107 : vector<8x128xf32>
    %109 = math.exp %108 : vector<8x128xf32>
    %cst_61 = arith.constant 1.000000e+00 : f32
    %110 = vector.broadcast %cst_61 : f32 to vector<8x128xf32>
    %111 = arith.addf %110, %109 : vector<8x128xf32>
    %112 = arith.divf %110, %111 : vector<8x128xf32>
    %113 = math.tanh %107 : vector<8x128xf32>
    %114 = vector.extract_strided_slice %112 {offsets = [0, 0], sizes = [8, 32], strides = [1, 1]} : vector<8x128xf32> to vector<8x32xf32>
    %115 = vector.extract_strided_slice %112 {offsets = [0, 32], sizes = [8, 32], strides = [1, 1]} : vector<8x128xf32> to vector<8x32xf32>
    %116 = vector.extract_strided_slice %112 {offsets = [0, 96], sizes = [8, 32], strides = [1, 1]} : vector<8x128xf32> to vector<8x32xf32>
    %117 = vector.extract_strided_slice %113 {offsets = [0, 64], sizes = [8, 32], strides = [1, 1]} : vector<8x128xf32> to vector<8x32xf32>
    %118 = arith.mulf %115, %98 : vector<8x32xf32>
    %119 = arith.mulf %114, %117 : vector<8x32xf32>
    %120 = arith.addf %118, %119 : vector<8x32xf32>
    %121 = math.tanh %120 : vector<8x32xf32>
    %122 = arith.mulf %116, %121 : vector<8x32xf32>
    %123 = arith.truncf %122 : vector<8x32xf32> to vector<8x32xbf16>
    %c24_62 = arith.constant 24 : index
    %c0_63 = arith.constant 0 : index
    %124 = vector.load %arg16[%c24_62, %c0_63] : memref<64x32xbf16, #tpu.memory_space<vmem>>, vector<8x32xbf16>
    tpu.vector_store %arg16[%c24_62, %c0_63], %123 {strides = array<i32>} : memref<64x32xbf16, #tpu.memory_space<vmem>>, vector<8x32xbf16>,
    %c32_64 = arith.constant 32 : index
    %c0_65 = arith.constant 0 : index
    %125 = vector.load %arg15[%c32_64, %c0_65] : memref<64x128xf32, #tpu.memory_space<vmem>>, vector<8x128xf32>
    %cst_66 = arith.constant dense<0.000000e+00> : vector<8x128xf32>
    %126 = tpu.matmul %122, %1, %cst_66 {dimension_numbers = #tpu.dot_dimension_numbers<[1], [0], [0], [1], [0, 0, 1, 1], [], []>} : vector<8x32xf32>, vector<32x128xf32>, vector<8x128xf32> -> vector<8x128xf32>
    %127 = arith.addf %125, %126 : vector<8x128xf32>
    %128 = vector.broadcast %2 : vector<1x128xf32> to vector<8x128xf32>
    %129 = arith.addf %127, %128 : vector<8x128xf32>
    %130 = arith.negf %129 : vector<8x128xf32>
    %131 = math.exp %130 : vector<8x128xf32>
    %cst_67 = arith.constant 1.000000e+00 : f32
    %132 = vector.broadcast %cst_67 : f32 to vector<8x128xf32>
    %133 = arith.addf %132, %131 : vector<8x128xf32>
    %134 = arith.divf %132, %133 : vector<8x128xf32>
    %135 = math.tanh %129 : vector<8x128xf32>
    %136 = vector.extract_strided_slice %134 {offsets = [0, 0], sizes = [8, 32], strides = [1, 1]} : vector<8x128xf32> to vector<8x32xf32>
    %137 = vector.extract_strided_slice %134 {offsets = [0, 32], sizes = [8, 32], strides = [1, 1]} : vector<8x128xf32> to vector<8x32xf32>
    %138 = vector.extract_strided_slice %134 {offsets = [0, 96], sizes = [8, 32], strides = [1, 1]} : vector<8x128xf32> to vector<8x32xf32>
    %139 = vector.extract_strided_slice %135 {offsets = [0, 64], sizes = [8, 32], strides = [1, 1]} : vector<8x128xf32> to vector<8x32xf32>
    %140 = arith.mulf %137, %120 : vector<8x32xf32>
    %141 = arith.mulf %136, %139 : vector<8x32xf32>
    %142 = arith.addf %140, %141 : vector<8x32xf32>
    %143 = math.tanh %142 : vector<8x32xf32>
    %144 = arith.mulf %138, %143 : vector<8x32xf32>
    %145 = arith.truncf %144 : vector<8x32xf32> to vector<8x32xbf16>
    %c32_68 = arith.constant 32 : index
    %c0_69 = arith.constant 0 : index
    %146 = vector.load %arg16[%c32_68, %c0_69] : memref<64x32xbf16, #tpu.memory_space<vmem>>, vector<8x32xbf16>
    tpu.vector_store %arg16[%c32_68, %c0_69], %145 {strides = array<i32>} : memref<64x32xbf16, #tpu.memory_space<vmem>>, vector<8x32xbf16>,
    %c40_70 = arith.constant 40 : index
    %c0_71 = arith.constant 0 : index
    %147 = vector.load %arg15[%c40_70, %c0_71] : memref<64x128xf32, #tpu.memory_space<vmem>>, vector<8x128xf32>
    %cst_72 = arith.constant dense<0.000000e+00> : vector<8x128xf32>
    %148 = tpu.matmul %144, %1, %cst_72 {dimension_numbers = #tpu.dot_dimension_numbers<[1], [0], [0], [1], [0, 0, 1, 1], [], []>} : vector<8x32xf32>, vector<32x128xf32>, vector<8x128xf32> -> vector<8x128xf32>
    %149 = arith.addf %147, %148 : vector<8x128xf32>
    %150 = vector.broadcast %2 : vector<1x128xf32> to vector<8x128xf32>
    %151 = arith.addf %149, %150 : vector<8x128xf32>
    %152 = arith.negf %151 : vector<8x128xf32>
    %153 = math.exp %152 : vector<8x128xf32>
    %cst_73 = arith.constant 1.000000e+00 : f32
    %154 = vector.broadcast %cst_73 : f32 to vector<8x128xf32>
    %155 = arith.addf %154, %153 : vector<8x128xf32>
    %156 = arith.divf %154, %155 : vector<8x128xf32>
    %157 = math.tanh %151 : vector<8x128xf32>
    %158 = vector.extract_strided_slice %156 {offsets = [0, 0], sizes = [8, 32], strides = [1, 1]} : vector<8x128xf32> to vector<8x32xf32>
    %159 = vector.extract_strided_slice %156 {offsets = [0, 32], sizes = [8, 32], strides = [1, 1]} : vector<8x128xf32> to vector<8x32xf32>
    %160 = vector.extract_strided_slice %156 {offsets = [0, 96], sizes = [8, 32], strides = [1, 1]} : vector<8x128xf32> to vector<8x32xf32>
    %161 = vector.extract_strided_slice %157 {offsets = [0, 64], sizes = [8, 32], strides = [1, 1]} : vector<8x128xf32> to vector<8x32xf32>
    %162 = arith.mulf %159, %142 : vector<8x32xf32>
    %163 = arith.mulf %158, %161 : vector<8x32xf32>
    %164 = arith.addf %162, %163 : vector<8x32xf32>
    %165 = math.tanh %164 : vector<8x32xf32>
    %166 = arith.mulf %160, %165 : vector<8x32xf32>
    %167 = arith.truncf %166 : vector<8x32xf32> to vector<8x32xbf16>
    %c40_74 = arith.constant 40 : index
    %c0_75 = arith.constant 0 : index
    %168 = vector.load %arg16[%c40_74, %c0_75] : memref<64x32xbf16, #tpu.memory_space<vmem>>, vector<8x32xbf16>
    tpu.vector_store %arg16[%c40_74, %c0_75], %167 {strides = array<i32>} : memref<64x32xbf16, #tpu.memory_space<vmem>>, vector<8x32xbf16>,
    %c48_76 = arith.constant 48 : index
    %c0_77 = arith.constant 0 : index
    %169 = vector.load %arg15[%c48_76, %c0_77] : memref<64x128xf32, #tpu.memory_space<vmem>>, vector<8x128xf32>
    %cst_78 = arith.constant dense<0.000000e+00> : vector<8x128xf32>
    %170 = tpu.matmul %166, %1, %cst_78 {dimension_numbers = #tpu.dot_dimension_numbers<[1], [0], [0], [1], [0, 0, 1, 1], [], []>} : vector<8x32xf32>, vector<32x128xf32>, vector<8x128xf32> -> vector<8x128xf32>
    %171 = arith.addf %169, %170 : vector<8x128xf32>
    %172 = vector.broadcast %2 : vector<1x128xf32> to vector<8x128xf32>
    %173 = arith.addf %171, %172 : vector<8x128xf32>
    %174 = arith.negf %173 : vector<8x128xf32>
    %175 = math.exp %174 : vector<8x128xf32>
    %cst_79 = arith.constant 1.000000e+00 : f32
    %176 = vector.broadcast %cst_79 : f32 to vector<8x128xf32>
    %177 = arith.addf %176, %175 : vector<8x128xf32>
    %178 = arith.divf %176, %177 : vector<8x128xf32>
    %179 = math.tanh %173 : vector<8x128xf32>
    %180 = vector.extract_strided_slice %178 {offsets = [0, 0], sizes = [8, 32], strides = [1, 1]} : vector<8x128xf32> to vector<8x32xf32>
    %181 = vector.extract_strided_slice %178 {offsets = [0, 32], sizes = [8, 32], strides = [1, 1]} : vector<8x128xf32> to vector<8x32xf32>
    %182 = vector.extract_strided_slice %178 {offsets = [0, 96], sizes = [8, 32], strides = [1, 1]} : vector<8x128xf32> to vector<8x32xf32>
    %183 = vector.extract_strided_slice %179 {offsets = [0, 64], sizes = [8, 32], strides = [1, 1]} : vector<8x128xf32> to vector<8x32xf32>
    %184 = arith.mulf %181, %164 : vector<8x32xf32>
    %185 = arith.mulf %180, %183 : vector<8x32xf32>
    %186 = arith.addf %184, %185 : vector<8x32xf32>
    %187 = math.tanh %186 : vector<8x32xf32>
    %188 = arith.mulf %182, %187 : vector<8x32xf32>
    %189 = arith.truncf %188 : vector<8x32xf32> to vector<8x32xbf16>
    %c48_80 = arith.constant 48 : index
    %c0_81 = arith.constant 0 : index
    %190 = vector.load %arg16[%c48_80, %c0_81] : memref<64x32xbf16, #tpu.memory_space<vmem>>, vector<8x32xbf16>
    tpu.vector_store %arg16[%c48_80, %c0_81], %189 {strides = array<i32>} : memref<64x32xbf16, #tpu.memory_space<vmem>>, vector<8x32xbf16>,
    %c56_82 = arith.constant 56 : index
    %c0_83 = arith.constant 0 : index
    %191 = vector.load %arg15[%c56_82, %c0_83] : memref<64x128xf32, #tpu.memory_space<vmem>>, vector<8x128xf32>
    %cst_84 = arith.constant dense<0.000000e+00> : vector<8x128xf32>
    %192 = tpu.matmul %188, %1, %cst_84 {dimension_numbers = #tpu.dot_dimension_numbers<[1], [0], [0], [1], [0, 0, 1, 1], [], []>} : vector<8x32xf32>, vector<32x128xf32>, vector<8x128xf32> -> vector<8x128xf32>
    %193 = arith.addf %191, %192 : vector<8x128xf32>
    %194 = vector.broadcast %2 : vector<1x128xf32> to vector<8x128xf32>
    %195 = arith.addf %193, %194 : vector<8x128xf32>
    %196 = arith.negf %195 : vector<8x128xf32>
    %197 = math.exp %196 : vector<8x128xf32>
    %cst_85 = arith.constant 1.000000e+00 : f32
    %198 = vector.broadcast %cst_85 : f32 to vector<8x128xf32>
    %199 = arith.addf %198, %197 : vector<8x128xf32>
    %200 = arith.divf %198, %199 : vector<8x128xf32>
    %201 = math.tanh %195 : vector<8x128xf32>
    %202 = vector.extract_strided_slice %200 {offsets = [0, 0], sizes = [8, 32], strides = [1, 1]} : vector<8x128xf32> to vector<8x32xf32>
    %203 = vector.extract_strided_slice %200 {offsets = [0, 32], sizes = [8, 32], strides = [1, 1]} : vector<8x128xf32> to vector<8x32xf32>
    %204 = vector.extract_strided_slice %200 {offsets = [0, 96], sizes = [8, 32], strides = [1, 1]} : vector<8x128xf32> to vector<8x32xf32>
    %205 = vector.extract_strided_slice %201 {offsets = [0, 64], sizes = [8, 32], strides = [1, 1]} : vector<8x128xf32> to vector<8x32xf32>
    %206 = arith.mulf %203, %186 : vector<8x32xf32>
    %207 = arith.mulf %202, %205 : vector<8x32xf32>
    %208 = arith.addf %206, %207 : vector<8x32xf32>
    %209 = math.tanh %208 : vector<8x32xf32>
    %210 = arith.mulf %204, %209 : vector<8x32xf32>
    %211 = arith.truncf %210 : vector<8x32xf32> to vector<8x32xbf16>
    %c56_86 = arith.constant 56 : index
    %c0_87 = arith.constant 0 : index
    %212 = vector.load %arg16[%c56_86, %c0_87] : memref<64x32xbf16, #tpu.memory_space<vmem>>, vector<8x32xbf16>
    tpu.vector_store %arg16[%c56_86, %c0_87], %211 {strides = array<i32>} : memref<64x32xbf16, #tpu.memory_space<vmem>>, vector<8x32xbf16>,
    %c0_88 = arith.constant 0 : index
    %c0_89 = arith.constant 0 : index
    %213 = vector.load %arg5[%c0_88, %c0_89] : memref<32x128xbf16, #tpu.memory_space<vmem>>, vector<32x128xbf16>
    %c0_90 = arith.constant 0 : index
    %c0_91 = arith.constant 0 : index
    %214 = vector.load %arg6[%c0_90, %c0_91] : memref<32x128xf32, #tpu.memory_space<vmem>>, vector<32x128xf32>
    %c0_92 = arith.constant 0 : index
    %c0_93 = arith.constant 0 : index
    %215 = vector.load %arg7[%c0_92, %c0_93] : memref<1x128xf32, #tpu.memory_space<vmem>>, vector<1x128xf32>
    %c0_94 = arith.constant 0 : index
    %c0_95 = arith.constant 0 : index
    %216 = vector.load %arg16[%c0_94, %c0_95] : memref<64x32xbf16, #tpu.memory_space<vmem>>, vector<64x32xbf16>
    %cst_96 = arith.constant dense<0.000000e+00> : vector<64x128xf32>
    %217 = tpu.matmul %216, %213, %cst_96 {dimension_numbers = #tpu.dot_dimension_numbers<[1], [0], [0], [1], [0, 0, 1, 1], [], []>} : vector<64x32xbf16>, vector<32x128xbf16>, vector<64x128xf32> -> vector<64x128xf32>
    %c0_97 = arith.constant 0 : index
    %c0_98 = arith.constant 0 : index
    %218 = vector.load %arg15[%c0_97, %c0_98] : memref<64x128xf32, #tpu.memory_space<vmem>>, vector<64x128xf32>
    tpu.vector_store %arg15[%c0_97, %c0_98], %217 {strides = array<i32>} : memref<64x128xf32, #tpu.memory_space<vmem>>, vector<64x128xf32>,
    %cst_99 = arith.constant 0.000000e+00 : f32
    %219 = vector.broadcast %cst_99 : f32 to vector<8x32xf32>
    %cst_100 = arith.constant 0.000000e+00 : f32
    %220 = vector.broadcast %cst_100 : f32 to vector<8x32xf32>
    %c0_101 = arith.constant 0 : index
    %c0_102 = arith.constant 0 : index
    %221 = vector.load %arg15[%c0_101, %c0_102] : memref<64x128xf32, #tpu.memory_space<vmem>>, vector<8x128xf32>
    %cst_103 = arith.constant dense<0.000000e+00> : vector<8x128xf32>
    %222 = tpu.matmul %219, %214, %cst_103 {dimension_numbers = #tpu.dot_dimension_numbers<[1], [0], [0], [1], [0, 0, 1, 1], [], []>} : vector<8x32xf32>, vector<32x128xf32>, vector<8x128xf32> -> vector<8x128xf32>
    %223 = arith.addf %221, %222 : vector<8x128xf32>
    %224 = vector.broadcast %215 : vector<1x128xf32> to vector<8x128xf32>
    %225 = arith.addf %223, %224 : vector<8x128xf32>
    %226 = arith.negf %225 : vector<8x128xf32>
    %227 = math.exp %226 : vector<8x128xf32>
    %cst_104 = arith.constant 1.000000e+00 : f32
    %228 = vector.broadcast %cst_104 : f32 to vector<8x128xf32>
    %229 = arith.addf %228, %227 : vector<8x128xf32>
    %230 = arith.divf %228, %229 : vector<8x128xf32>
    %231 = math.tanh %225 : vector<8x128xf32>
    %232 = vector.extract_strided_slice %230 {offsets = [0, 0], sizes = [8, 32], strides = [1, 1]} : vector<8x128xf32> to vector<8x32xf32>
    %233 = vector.extract_strided_slice %230 {offsets = [0, 32], sizes = [8, 32], strides = [1, 1]} : vector<8x128xf32> to vector<8x32xf32>
    %234 = vector.extract_strided_slice %230 {offsets = [0, 96], sizes = [8, 32], strides = [1, 1]} : vector<8x128xf32> to vector<8x32xf32>
    %235 = vector.extract_strided_slice %231 {offsets = [0, 64], sizes = [8, 32], strides = [1, 1]} : vector<8x128xf32> to vector<8x32xf32>
    %236 = arith.mulf %233, %220 : vector<8x32xf32>
    %237 = arith.mulf %232, %235 : vector<8x32xf32>
    %238 = arith.addf %236, %237 : vector<8x32xf32>
    %239 = math.tanh %238 : vector<8x32xf32>
    %240 = arith.mulf %234, %239 : vector<8x32xf32>
    %c8_105 = arith.constant 8 : index
    %c0_106 = arith.constant 0 : index
    %241 = vector.load %arg15[%c8_105, %c0_106] : memref<64x128xf32, #tpu.memory_space<vmem>>, vector<8x128xf32>
    %cst_107 = arith.constant dense<0.000000e+00> : vector<8x128xf32>
    %242 = tpu.matmul %240, %214, %cst_107 {dimension_numbers = #tpu.dot_dimension_numbers<[1], [0], [0], [1], [0, 0, 1, 1], [], []>} : vector<8x32xf32>, vector<32x128xf32>, vector<8x128xf32> -> vector<8x128xf32>
    %243 = arith.addf %241, %242 : vector<8x128xf32>
    %244 = vector.broadcast %215 : vector<1x128xf32> to vector<8x128xf32>
    %245 = arith.addf %243, %244 : vector<8x128xf32>
    %246 = arith.negf %245 : vector<8x128xf32>
    %247 = math.exp %246 : vector<8x128xf32>
    %cst_108 = arith.constant 1.000000e+00 : f32
    %248 = vector.broadcast %cst_108 : f32 to vector<8x128xf32>
    %249 = arith.addf %248, %247 : vector<8x128xf32>
    %250 = arith.divf %248, %249 : vector<8x128xf32>
    %251 = math.tanh %245 : vector<8x128xf32>
    %252 = vector.extract_strided_slice %250 {offsets = [0, 0], sizes = [8, 32], strides = [1, 1]} : vector<8x128xf32> to vector<8x32xf32>
    %253 = vector.extract_strided_slice %250 {offsets = [0, 32], sizes = [8, 32], strides = [1, 1]} : vector<8x128xf32> to vector<8x32xf32>
    %254 = vector.extract_strided_slice %250 {offsets = [0, 96], sizes = [8, 32], strides = [1, 1]} : vector<8x128xf32> to vector<8x32xf32>
    %255 = vector.extract_strided_slice %251 {offsets = [0, 64], sizes = [8, 32], strides = [1, 1]} : vector<8x128xf32> to vector<8x32xf32>
    %256 = arith.mulf %253, %238 : vector<8x32xf32>
    %257 = arith.mulf %252, %255 : vector<8x32xf32>
    %258 = arith.addf %256, %257 : vector<8x32xf32>
    %259 = math.tanh %258 : vector<8x32xf32>
    %260 = arith.mulf %254, %259 : vector<8x32xf32>
    %c16_109 = arith.constant 16 : index
    %c0_110 = arith.constant 0 : index
    %261 = vector.load %arg15[%c16_109, %c0_110] : memref<64x128xf32, #tpu.memory_space<vmem>>, vector<8x128xf32>
    %cst_111 = arith.constant dense<0.000000e+00> : vector<8x128xf32>
    %262 = tpu.matmul %260, %214, %cst_111 {dimension_numbers = #tpu.dot_dimension_numbers<[1], [0], [0], [1], [0, 0, 1, 1], [], []>} : vector<8x32xf32>, vector<32x128xf32>, vector<8x128xf32> -> vector<8x128xf32>
    %263 = arith.addf %261, %262 : vector<8x128xf32>
    %264 = vector.broadcast %215 : vector<1x128xf32> to vector<8x128xf32>
    %265 = arith.addf %263, %264 : vector<8x128xf32>
    %266 = arith.negf %265 : vector<8x128xf32>
    %267 = math.exp %266 : vector<8x128xf32>
    %cst_112 = arith.constant 1.000000e+00 : f32
    %268 = vector.broadcast %cst_112 : f32 to vector<8x128xf32>
    %269 = arith.addf %268, %267 : vector<8x128xf32>
    %270 = arith.divf %268, %269 : vector<8x128xf32>
    %271 = math.tanh %265 : vector<8x128xf32>
    %272 = vector.extract_strided_slice %270 {offsets = [0, 0], sizes = [8, 32], strides = [1, 1]} : vector<8x128xf32> to vector<8x32xf32>
    %273 = vector.extract_strided_slice %270 {offsets = [0, 32], sizes = [8, 32], strides = [1, 1]} : vector<8x128xf32> to vector<8x32xf32>
    %274 = vector.extract_strided_slice %270 {offsets = [0, 96], sizes = [8, 32], strides = [1, 1]} : vector<8x128xf32> to vector<8x32xf32>
    %275 = vector.extract_strided_slice %271 {offsets = [0, 64], sizes = [8, 32], strides = [1, 1]} : vector<8x128xf32> to vector<8x32xf32>
    %276 = arith.mulf %273, %258 : vector<8x32xf32>
    %277 = arith.mulf %272, %275 : vector<8x32xf32>
    %278 = arith.addf %276, %277 : vector<8x32xf32>
    %279 = math.tanh %278 : vector<8x32xf32>
    %280 = arith.mulf %274, %279 : vector<8x32xf32>
    %c24_113 = arith.constant 24 : index
    %c0_114 = arith.constant 0 : index
    %281 = vector.load %arg15[%c24_113, %c0_114] : memref<64x128xf32, #tpu.memory_space<vmem>>, vector<8x128xf32>
    %cst_115 = arith.constant dense<0.000000e+00> : vector<8x128xf32>
    %282 = tpu.matmul %280, %214, %cst_115 {dimension_numbers = #tpu.dot_dimension_numbers<[1], [0], [0], [1], [0, 0, 1, 1], [], []>} : vector<8x32xf32>, vector<32x128xf32>, vector<8x128xf32> -> vector<8x128xf32>
    %283 = arith.addf %281, %282 : vector<8x128xf32>
    %284 = vector.broadcast %215 : vector<1x128xf32> to vector<8x128xf32>
    %285 = arith.addf %283, %284 : vector<8x128xf32>
    %286 = arith.negf %285 : vector<8x128xf32>
    %287 = math.exp %286 : vector<8x128xf32>
    %cst_116 = arith.constant 1.000000e+00 : f32
    %288 = vector.broadcast %cst_116 : f32 to vector<8x128xf32>
    %289 = arith.addf %288, %287 : vector<8x128xf32>
    %290 = arith.divf %288, %289 : vector<8x128xf32>
    %291 = math.tanh %285 : vector<8x128xf32>
    %292 = vector.extract_strided_slice %290 {offsets = [0, 0], sizes = [8, 32], strides = [1, 1]} : vector<8x128xf32> to vector<8x32xf32>
    %293 = vector.extract_strided_slice %290 {offsets = [0, 32], sizes = [8, 32], strides = [1, 1]} : vector<8x128xf32> to vector<8x32xf32>
    %294 = vector.extract_strided_slice %290 {offsets = [0, 96], sizes = [8, 32], strides = [1, 1]} : vector<8x128xf32> to vector<8x32xf32>
    %295 = vector.extract_strided_slice %291 {offsets = [0, 64], sizes = [8, 32], strides = [1, 1]} : vector<8x128xf32> to vector<8x32xf32>
    %296 = arith.mulf %293, %278 : vector<8x32xf32>
    %297 = arith.mulf %292, %295 : vector<8x32xf32>
    %298 = arith.addf %296, %297 : vector<8x32xf32>
    %299 = math.tanh %298 : vector<8x32xf32>
    %300 = arith.mulf %294, %299 : vector<8x32xf32>
    %c32_117 = arith.constant 32 : index
    %c0_118 = arith.constant 0 : index
    %301 = vector.load %arg15[%c32_117, %c0_118] : memref<64x128xf32, #tpu.memory_space<vmem>>, vector<8x128xf32>
    %cst_119 = arith.constant dense<0.000000e+00> : vector<8x128xf32>
    %302 = tpu.matmul %300, %214, %cst_119 {dimension_numbers = #tpu.dot_dimension_numbers<[1], [0], [0], [1], [0, 0, 1, 1], [], []>} : vector<8x32xf32>, vector<32x128xf32>, vector<8x128xf32> -> vector<8x128xf32>
    %303 = arith.addf %301, %302 : vector<8x128xf32>
    %304 = vector.broadcast %215 : vector<1x128xf32> to vector<8x128xf32>
    %305 = arith.addf %303, %304 : vector<8x128xf32>
    %306 = arith.negf %305 : vector<8x128xf32>
    %307 = math.exp %306 : vector<8x128xf32>
    %cst_120 = arith.constant 1.000000e+00 : f32
    %308 = vector.broadcast %cst_120 : f32 to vector<8x128xf32>
    %309 = arith.addf %308, %307 : vector<8x128xf32>
    %310 = arith.divf %308, %309 : vector<8x128xf32>
    %311 = math.tanh %305 : vector<8x128xf32>
    %312 = vector.extract_strided_slice %310 {offsets = [0, 0], sizes = [8, 32], strides = [1, 1]} : vector<8x128xf32> to vector<8x32xf32>
    %313 = vector.extract_strided_slice %310 {offsets = [0, 32], sizes = [8, 32], strides = [1, 1]} : vector<8x128xf32> to vector<8x32xf32>
    %314 = vector.extract_strided_slice %310 {offsets = [0, 96], sizes = [8, 32], strides = [1, 1]} : vector<8x128xf32> to vector<8x32xf32>
    %315 = vector.extract_strided_slice %311 {offsets = [0, 64], sizes = [8, 32], strides = [1, 1]} : vector<8x128xf32> to vector<8x32xf32>
    %316 = arith.mulf %313, %298 : vector<8x32xf32>
    %317 = arith.mulf %312, %315 : vector<8x32xf32>
    %318 = arith.addf %316, %317 : vector<8x32xf32>
    %319 = math.tanh %318 : vector<8x32xf32>
    %320 = arith.mulf %314, %319 : vector<8x32xf32>
    %c40_121 = arith.constant 40 : index
    %c0_122 = arith.constant 0 : index
    %321 = vector.load %arg15[%c40_121, %c0_122] : memref<64x128xf32, #tpu.memory_space<vmem>>, vector<8x128xf32>
    %cst_123 = arith.constant dense<0.000000e+00> : vector<8x128xf32>
    %322 = tpu.matmul %320, %214, %cst_123 {dimension_numbers = #tpu.dot_dimension_numbers<[1], [0], [0], [1], [0, 0, 1, 1], [], []>} : vector<8x32xf32>, vector<32x128xf32>, vector<8x128xf32> -> vector<8x128xf32>
    %323 = arith.addf %321, %322 : vector<8x128xf32>
    %324 = vector.broadcast %215 : vector<1x128xf32> to vector<8x128xf32>
    %325 = arith.addf %323, %324 : vector<8x128xf32>
    %326 = arith.negf %325 : vector<8x128xf32>
    %327 = math.exp %326 : vector<8x128xf32>
    %cst_124 = arith.constant 1.000000e+00 : f32
    %328 = vector.broadcast %cst_124 : f32 to vector<8x128xf32>
    %329 = arith.addf %328, %327 : vector<8x128xf32>
    %330 = arith.divf %328, %329 : vector<8x128xf32>
    %331 = math.tanh %325 : vector<8x128xf32>
    %332 = vector.extract_strided_slice %330 {offsets = [0, 0], sizes = [8, 32], strides = [1, 1]} : vector<8x128xf32> to vector<8x32xf32>
    %333 = vector.extract_strided_slice %330 {offsets = [0, 32], sizes = [8, 32], strides = [1, 1]} : vector<8x128xf32> to vector<8x32xf32>
    %334 = vector.extract_strided_slice %330 {offsets = [0, 96], sizes = [8, 32], strides = [1, 1]} : vector<8x128xf32> to vector<8x32xf32>
    %335 = vector.extract_strided_slice %331 {offsets = [0, 64], sizes = [8, 32], strides = [1, 1]} : vector<8x128xf32> to vector<8x32xf32>
    %336 = arith.mulf %333, %318 : vector<8x32xf32>
    %337 = arith.mulf %332, %335 : vector<8x32xf32>
    %338 = arith.addf %336, %337 : vector<8x32xf32>
    %339 = math.tanh %338 : vector<8x32xf32>
    %340 = arith.mulf %334, %339 : vector<8x32xf32>
    %c48_125 = arith.constant 48 : index
    %c0_126 = arith.constant 0 : index
    %341 = vector.load %arg15[%c48_125, %c0_126] : memref<64x128xf32, #tpu.memory_space<vmem>>, vector<8x128xf32>
    %cst_127 = arith.constant dense<0.000000e+00> : vector<8x128xf32>
    %342 = tpu.matmul %340, %214, %cst_127 {dimension_numbers = #tpu.dot_dimension_numbers<[1], [0], [0], [1], [0, 0, 1, 1], [], []>} : vector<8x32xf32>, vector<32x128xf32>, vector<8x128xf32> -> vector<8x128xf32>
    %343 = arith.addf %341, %342 : vector<8x128xf32>
    %344 = vector.broadcast %215 : vector<1x128xf32> to vector<8x128xf32>
    %345 = arith.addf %343, %344 : vector<8x128xf32>
    %346 = arith.negf %345 : vector<8x128xf32>
    %347 = math.exp %346 : vector<8x128xf32>
    %cst_128 = arith.constant 1.000000e+00 : f32
    %348 = vector.broadcast %cst_128 : f32 to vector<8x128xf32>
    %349 = arith.addf %348, %347 : vector<8x128xf32>
    %350 = arith.divf %348, %349 : vector<8x128xf32>
    %351 = math.tanh %345 : vector<8x128xf32>
    %352 = vector.extract_strided_slice %350 {offsets = [0, 0], sizes = [8, 32], strides = [1, 1]} : vector<8x128xf32> to vector<8x32xf32>
    %353 = vector.extract_strided_slice %350 {offsets = [0, 32], sizes = [8, 32], strides = [1, 1]} : vector<8x128xf32> to vector<8x32xf32>
    %354 = vector.extract_strided_slice %350 {offsets = [0, 96], sizes = [8, 32], strides = [1, 1]} : vector<8x128xf32> to vector<8x32xf32>
    %355 = vector.extract_strided_slice %351 {offsets = [0, 64], sizes = [8, 32], strides = [1, 1]} : vector<8x128xf32> to vector<8x32xf32>
    %356 = arith.mulf %353, %338 : vector<8x32xf32>
    %357 = arith.mulf %352, %355 : vector<8x32xf32>
    %358 = arith.addf %356, %357 : vector<8x32xf32>
    %359 = math.tanh %358 : vector<8x32xf32>
    %360 = arith.mulf %354, %359 : vector<8x32xf32>
    %c56_129 = arith.constant 56 : index
    %c0_130 = arith.constant 0 : index
    %361 = vector.load %arg15[%c56_129, %c0_130] : memref<64x128xf32, #tpu.memory_space<vmem>>, vector<8x128xf32>
    %cst_131 = arith.constant dense<0.000000e+00> : vector<8x128xf32>
    %362 = tpu.matmul %360, %214, %cst_131 {dimension_numbers = #tpu.dot_dimension_numbers<[1], [0], [0], [1], [0, 0, 1, 1], [], []>} : vector<8x32xf32>, vector<32x128xf32>, vector<8x128xf32> -> vector<8x128xf32>
    %363 = arith.addf %361, %362 : vector<8x128xf32>
    %364 = vector.broadcast %215 : vector<1x128xf32> to vector<8x128xf32>
    %365 = arith.addf %363, %364 : vector<8x128xf32>
    %366 = arith.negf %365 : vector<8x128xf32>
    %367 = math.exp %366 : vector<8x128xf32>
    %cst_132 = arith.constant 1.000000e+00 : f32
    %368 = vector.broadcast %cst_132 : f32 to vector<8x128xf32>
    %369 = arith.addf %368, %367 : vector<8x128xf32>
    %370 = arith.divf %368, %369 : vector<8x128xf32>
    %371 = math.tanh %365 : vector<8x128xf32>
    %372 = vector.extract_strided_slice %370 {offsets = [0, 0], sizes = [8, 32], strides = [1, 1]} : vector<8x128xf32> to vector<8x32xf32>
    %373 = vector.extract_strided_slice %370 {offsets = [0, 32], sizes = [8, 32], strides = [1, 1]} : vector<8x128xf32> to vector<8x32xf32>
    %374 = vector.extract_strided_slice %370 {offsets = [0, 96], sizes = [8, 32], strides = [1, 1]} : vector<8x128xf32> to vector<8x32xf32>
    %375 = vector.extract_strided_slice %371 {offsets = [0, 64], sizes = [8, 32], strides = [1, 1]} : vector<8x128xf32> to vector<8x32xf32>
    %376 = arith.mulf %373, %358 : vector<8x32xf32>
    %377 = arith.mulf %372, %375 : vector<8x32xf32>
    %378 = arith.addf %376, %377 : vector<8x32xf32>
    %379 = math.tanh %378 : vector<8x32xf32>
    %380 = arith.mulf %374, %379 : vector<8x32xf32>
    %c0_133 = arith.constant 0 : index
    %c0_134 = arith.constant 0 : index
    %381 = vector.load %arg8[%c0_133, %c0_134] : memref<32x128xf32, #tpu.memory_space<vmem>>, vector<32x128xf32>
    %cst_135 = arith.constant dense<0.000000e+00> : vector<8x128xf32>
    %382 = tpu.matmul %380, %381, %cst_135 {dimension_numbers = #tpu.dot_dimension_numbers<[1], [0], [0], [1], [0, 0, 1, 1], [], []>} : vector<8x32xf32>, vector<32x128xf32>, vector<8x128xf32> -> vector<8x128xf32>
    %c0_136 = arith.constant 0 : index
    %c0_137 = arith.constant 0 : index
    %383 = vector.load %arg9[%c0_136, %c0_137] : memref<1x128xf32, #tpu.memory_space<vmem>>, vector<1x128xf32>
    %384 = vector.broadcast %383 : vector<1x128xf32> to vector<8x128xf32>
    %385 = arith.addf %382, %384 : vector<8x128xf32>
    %cst_138 = arith.constant 0.000000e+00 : f32
    %386 = vector.broadcast %cst_138 : f32 to vector<8x128xf32>
    %387 = arith.maximumf %385, %386 : vector<8x128xf32>
    %c0_139 = arith.constant 0 : index
    %c0_140 = arith.constant 0 : index
    %388 = vector.load %arg10[%c0_139, %c0_140] : memref<128x128xf32, #tpu.memory_space<vmem>>, vector<128x128xf32>
    %cst_141 = arith.constant dense<0.000000e+00> : vector<8x128xf32>
    %389 = tpu.matmul %387, %388, %cst_141 {dimension_numbers = #tpu.dot_dimension_numbers<[1], [0], [0], [1], [0, 0, 1, 1], [], []>} : vector<8x128xf32>, vector<128x128xf32>, vector<8x128xf32> -> vector<8x128xf32>
    %c0_142 = arith.constant 0 : index
    %c0_143 = arith.constant 0 : index
    %390 = vector.load %arg11[%c0_142, %c0_143] : memref<1x128xf32, #tpu.memory_space<vmem>>, vector<1x128xf32>
    %391 = vector.broadcast %390 : vector<1x128xf32> to vector<8x128xf32>
    %392 = arith.addf %389, %391 : vector<8x128xf32>
    %cst_144 = arith.constant 0.000000e+00 : f32
    %393 = vector.broadcast %cst_144 : f32 to vector<8x128xf32>
    %394 = arith.maximumf %392, %393 : vector<8x128xf32>
    %c0_145 = arith.constant 0 : index
    %c0_146 = arith.constant 0 : index
    %395 = vector.load %arg12[%c0_145, %c0_146] : memref<128x128xf32, #tpu.memory_space<vmem>>, vector<128x128xf32>
    %cst_147 = arith.constant dense<0.000000e+00> : vector<8x128xf32>
    %396 = tpu.matmul %394, %395, %cst_147 {dimension_numbers = #tpu.dot_dimension_numbers<[1], [0], [0], [1], [0, 0, 1, 1], [], []>} : vector<8x128xf32>, vector<128x128xf32>, vector<8x128xf32> -> vector<8x128xf32>
    %c0_148 = arith.constant 0 : index
    %c0_149 = arith.constant 0 : index
    %397 = vector.load %arg13[%c0_148, %c0_149] : memref<1x128xf32, #tpu.memory_space<vmem>>, vector<1x128xf32>
    %398 = vector.broadcast %397 : vector<1x128xf32> to vector<8x128xf32>
    %399 = arith.addf %396, %398 : vector<8x128xf32>
    %cst_150 = arith.constant dense<0xFF800000> : vector<8xf32>
    %400 = vector.multi_reduction <maximumf>, %399, %cst_150 [1] : vector<8x128xf32> to vector<8xf32>
    %401 = vector.shape_cast %400 : vector<8xf32> to vector<8x1xf32>
    %402 = vector.broadcast %401 : vector<8x1xf32> to vector<8x128xf32>
    %403 = arith.subf %399, %402 : vector<8x128xf32>
    %404 = math.exp %403 : vector<8x128xf32>
    %cst_151 = arith.constant dense<0.000000e+00> : vector<8xf32>
    %405 = vector.multi_reduction <add>, %404, %cst_151 [1] : vector<8x128xf32> to vector<8xf32>
    %406 = vector.shape_cast %405 : vector<8xf32> to vector<8x1xf32>
    %407 = vector.broadcast %406 : vector<8x1xf32> to vector<8x128xf32>
    %408 = arith.divf %404, %407 : vector<8x128xf32>
    %c0_152 = arith.constant 0 : index
    %c0_153 = arith.constant 0 : index
    %409 = vector.load %arg14[%c0_152, %c0_153] : memref<8x128xf32, #tpu.memory_space<vmem>>, vector<8x128xf32>
    tpu.vector_store %arg14[%c0_152, %c0_153], %408 {strides = array<i32>} : memref<8x128xf32, #tpu.memory_space<vmem>>, vector<8x128xf32>,
    return
  }
  func.func @transform_0(%arg0: i32) -> (i32, i32, i32) {
    %c0_i32 = arith.constant 0 : i32
    %c0_i32_0 = arith.constant 0 : i32
    %c0_i32_1 = arith.constant 0 : i32
    return %c0_i32, %arg0, %c0_i32_0 : i32, i32, i32
  }
  func.func @transform_1(%arg0: i32) -> (i32, i32) {
    %c0_i32 = arith.constant 0 : i32
    %c0_i32_0 = arith.constant 0 : i32
    %c0_i32_1 = arith.constant 0 : i32
    return %c0_i32, %c0_i32_0 : i32, i32
  }
  func.func @transform_2(%arg0: i32) -> (i32, i32) {
    %c0_i32 = arith.constant 0 : i32
    %c0_i32_0 = arith.constant 0 : i32
    %c0_i32_1 = arith.constant 0 : i32
    return %c0_i32, %c0_i32_0 : i32, i32
  }
  func.func @transform_3(%arg0: i32) -> (i32, i32) {
    %c0_i32 = arith.constant 0 : i32
    %c0_i32_0 = arith.constant 0 : i32
    %c0_i32_1 = arith.constant 0 : i32
    return %c0_i32, %c0_i32_0 : i32, i32
  }
  func.func @transform_4(%arg0: i32) -> (i32, i32) {
    %c0_i32 = arith.constant 0 : i32
    %c0_i32_0 = arith.constant 0 : i32
    %c0_i32_1 = arith.constant 0 : i32
    return %c0_i32, %c0_i32_0 : i32, i32
  }
  func.func @transform_5(%arg0: i32) -> (i32, i32) {
    %c0_i32 = arith.constant 0 : i32
    %c0_i32_0 = arith.constant 0 : i32
    %c0_i32_1 = arith.constant 0 : i32
    return %c0_i32, %c0_i32_0 : i32, i32
  }
  func.func @transform_6(%arg0: i32) -> (i32, i32) {
    %c0_i32 = arith.constant 0 : i32
    %c0_i32_0 = arith.constant 0 : i32
    %c0_i32_1 = arith.constant 0 : i32
    return %c0_i32, %c0_i32_0 : i32, i32
  }
  func.func @transform_7(%arg0: i32) -> (i32, i32) {
    %c0_i32 = arith.constant 0 : i32
    %c0_i32_0 = arith.constant 0 : i32
    %c0_i32_1 = arith.constant 0 : i32
    return %c0_i32, %c0_i32_0 : i32, i32
  }
  func.func @transform_8(%arg0: i32) -> (i32, i32) {
    %c0_i32 = arith.constant 0 : i32
    %c0_i32_0 = arith.constant 0 : i32
    %c0_i32_1 = arith.constant 0 : i32
    return %c0_i32, %c0_i32_0 : i32, i32
  }
  func.func @transform_9(%arg0: i32) -> (i32, i32) {
    %c0_i32 = arith.constant 0 : i32
    %c0_i32_0 = arith.constant 0 : i32
    %c0_i32_1 = arith.constant 0 : i32
    return %c0_i32, %c0_i32_0 : i32, i32
  }
  func.func @transform_10(%arg0: i32) -> (i32, i32) {
    %c0_i32 = arith.constant 0 : i32
    %c0_i32_0 = arith.constant 0 : i32
    %c0_i32_1 = arith.constant 0 : i32
    return %c0_i32, %c0_i32_0 : i32, i32
  }
  func.func @transform_11(%arg0: i32) -> (i32, i32) {
    %c0_i32 = arith.constant 0 : i32
    %c0_i32_0 = arith.constant 0 : i32
    %c0_i32_1 = arith.constant 0 : i32
    return %c0_i32, %c0_i32_0 : i32, i32
  }
  func.func @transform_12(%arg0: i32) -> (i32, i32) {
    %c0_i32 = arith.constant 0 : i32
    %c0_i32_0 = arith.constant 0 : i32
    %c0_i32_1 = arith.constant 0 : i32
    return %c0_i32, %c0_i32_0 : i32, i32
  }
  func.func @transform_13(%arg0: i32) -> (i32, i32) {
    %c0_i32 = arith.constant 0 : i32
    %c0_i32_0 = arith.constant 0 : i32
    return %arg0, %c0_i32 : i32, i32
  }
}

</mosaic_0001>

<bundles_post_ra>
// kernel: fall_detection_lstm_forward.1
= control target key start
LH: loop header
LB: loop body
LE: loop exit
PB: predicated region body
PF: predicated region fallthrough
CT: control target
= control target key end

     0   :  { %18 = vsyncpa [#allocation5], 0  ;;  %s2512_s0 = inlined_call_operand.vmem [shape: bf16[8,8,16], index: 0, kind: input, shape index: {}]   ;;  %s2513_s1 = inlined_call_operand.vmem [shape: bf16[16,128], index: 1, kind: input, shape index: {}]   ;;  %s2514_s2 = inlined_call_operand.vmem [shape: f32[32,128], index: 2, kind: input, shape index: {}]   ;;  %s2515_s3 = inlined_call_operand.hbm [shape: f32[1,128], index: 3, kind: input, shape index: {}]   ;;  %s2516_s4 = inlined_call_operand.hbm [shape: bf16[32,128], index: 4, kind: input, shape index: {}]   ;;  %s2517_s5 = inlined_call_operand.vmem [shape: f32[32,128], index: 5, kind: input, shape index: {}]   ;;  %s2518_s6 = inlined_call_operand.vmem [shape: f32[1,128], index: 6, kind: input, shape index: {}]   ;;  %s2519_s7 = inlined_call_operand.vmem [shape: f32[32,128], index: 7, kind: input, shape index: {}]   ;;  %s2520_s8 = inlined_call_operand.hbm [shape: f32[1,128], index: 8, kind: input, shape index: {}]   ;;  %s2521_s9 = inlined_call_operand.hbm [shape: f32[128,128], index: 9, kind: input, shape index: {}]   ;;  %s2522_s10 = inlined_call_operand.hbm [shape: f32[1,128], index: 10, kind: input, shape index: {}]   ;;  %s2523_s11 = inlined_call_operand.hbm [shape: f32[128,128], index: 11, kind: input, shape index: {}]   ;;  %s2524_s12 = inlined_call_operand.hbm [shape: f32[1,128], index: 12, kind: input, shape index: {}]   ;;  %s2525_s13 = inlined_call_operand.vmem [shape: f32[8,128], index: 13, kind: output, shape index: {}]  }
   0x1   :  { %19 = vsyncpa [#allocation7], 0 }
   0x2   :  { %20 = vsyncpa [#allocation10], 0  ;;  %s43_s27 = sshll.u32 %s2516_s4, 4  ;;  %s44_s27 = int_to_ptr.hbm [resolvable:$true] %s43_s27 }
   0x3   :  { %21 = vsyncpa [#allocation13], 0  ;;  %s2056_s28 = smov [#allocation6]   ;;  %s73_s15 = sshll.u32 %s2521_s9, 4  ;;  %s74_s15 = int_to_ptr.hbm [resolvable:$true] %s73_s15 }
   0x4   :  { %s45_s29 = sshll.u32 %s2056_s28, 4  ;;  %s2057_s16 = smov 64   ;;  %s46_s29 = int_to_ptr.vmem [resolvable:$true] %s45_s29 }
   0x5   :  { %s2058_s17 = smov 4   ;;  %s2059_s18 = smov [#allocation9]  }
   0x6   :  { %51 = dma.hbm_to_vmem [thread:$0]  %s44_s27, 256, %s46_s29, [#allocation7], %s2057_s16, %s2057_s16, %s2058_s17  }
   0x7   :  { %s75_s19 = sshll.u32 %s2059_s18, 4  ;;  %s2060_s20 = smov 128   ;;  %s76_s19 = int_to_ptr.vmem [resolvable:$true] %s75_s19 }
   0x8   :  { %s2061_s4 = smov 8   ;;  %s97_s23 = sshll.u32 %s2523_s11, 4  ;;  %s98_s23 = int_to_ptr.hbm [resolvable:$true] %s97_s23 }
   0x9   :  { %81 = dma.hbm_to_vmem [thread:$0]  %s74_s15, 2048, %s76_s19, [#allocation10], %s2060_s20, %s2060_s20, %s2061_s4  }
   0xa   :  { %s2062_s24 = smov [#allocation12]   ;;  %s33_s28 = sshll.u32 %s2515_s3, 4  ;;  %s34_s28 = int_to_ptr.hbm [resolvable:$true] %s33_s28 }
   0xb   :  { %s99_s25 = sshll.u32 %s2062_s24, 4  ;;  %s2063_s27 = smov [#allocation4]   ;;  %s100_s25 = int_to_ptr.vmem [resolvable:$true] %s99_s25 }
   0xc   :  { %105 = dma.hbm_to_vmem [thread:$0]  %s98_s23, 2048, %s100_s25, [#allocation13], %s2060_s20, %s2060_s20, %s2061_s4  }
   0xd   :  { %s35_s29 = sshll.u32 %s2063_s27, 4  ;;  %s63_s15 = sshll.u32 %s2520_s8, 4  ;;  %s36_s29 = int_to_ptr.vmem [resolvable:$true] %s35_s29  ;;  %s64_s15 = int_to_ptr.hbm [resolvable:$true] %s63_s15 }
   0xe   :  { %38 = dma.hbm_to_vmem [thread:$0]  %s34_s28, 16, %s36_s29, [#allocation5]  }
   0xf   :  { %s87_s18 = sshll.u32 %s2522_s10, 4  ;;  %s2064_s19 = smov [#allocation8]   ;;  %s88_s18 = int_to_ptr.hbm [resolvable:$true] %s87_s18 }
  0x10   :  { %s65_s21 = sshll.u32 %s2064_s19, 4  ;;  %s2065_s3 = smov [#allocation11]   ;;  %s66_s21 = int_to_ptr.vmem [resolvable:$true] %s65_s21 }
  0x11   :  { %68 = dma.hbm_to_vmem [thread:$0]  %s64_s15, 16, %s66_s21, [#allocation7]  }
  0x12   :  { %s89_s20 = sshll.u32 %s2065_s3, 4  ;;  %s111_s23 = sshll.u32 %s2524_s12, 4  ;;  %s90_s20 = int_to_ptr.vmem [resolvable:$true] %s89_s20  ;;  %s112_s23 = int_to_ptr.hbm [resolvable:$true] %s111_s23 }
  0x13   :  { %92 = dma.hbm_to_vmem [thread:$0]  %s88_s18, 16, %s90_s20, [#allocation10]  }
  0x14   :  { %s2066_s8 = smov [#allocation14]  }
  0x15   :  { %s113_s24 = sshll.u32 %s2066_s8, 4  ;;  %s114_s24 = int_to_ptr.vmem [resolvable:$true] %s113_s24 }
  0x16   :  { %116 = dma.hbm_to_vmem [thread:$0]  %s112_s23, 16, %s114_s24, [#allocation13]  }
  0x17   :  { %2048 = dma.done.wait [#allocation5], 16  }
  0x18   :  { %2049 = vsyncadd [#allocation5], 4294967280 }
  0x19   :  { %2050 = dma.done.wait [#allocation7], 272  }
  0x1a   :  { %2051 = vsyncadd [#allocation7], 4294967024 }
  0x1b   :  { %2052 = dma.done.wait [#allocation10], 2064  }
  0x1c   :  { %2053 = vsyncadd [#allocation10], 4294965232 }
  0x1d   :  { %2054 = dma.done.wait [#allocation13], 2064  }
  0x1e   :  { %2055 = vsyncadd [#allocation13], 4294965232  ;;  %v1722_v0 = vld [vmem:[%s2513_s1] sm:$0xff]  ;;  %v2168_v1 = vld [vmem:[%s2514_s2 + $0x18] sm:$0xff]  ;;  %vm160_vm0 = vcmask 130048   ;;  %v2067_v7 = vmov 0.0  }
  0x1f   :  { %v1655_v2 = vld [vmem:[%s2512_s0 + $0x10] sm:$0xf]  ;;  %v153_v3 = vld [vmem:[%s2512_s0] sm:$0xf]  ;;  %247 = vmatpush.bf16.msra.mxu0 %v1722_v0  ;;  %171 = vmatpush.bf16.msra.mxu3 %v1722_v0  ;;  %v2187_v5 = vld [vmem:[%s2514_s2 + $0x8] sm:$0xff]  ;;  %vm312_vm5 = vcmask 261120  }
  0x20   :  { %v2179_v4 = vld [vmem:[%s2514_s2 + $0x10] sm:$0xff]  ;;  %190 = vmatpush.bf16.msra.mxu1 %v1722_v0  ;;  %209 = vmatpush.bf16.msra.mxu2 %v1722_v0  ;;  %v2193_v6 = vld [vmem:[%s2514_s2] sm:$0xff]  ;;  %s2068_s2 = smov 32   ;;  %v1653_v36 = vld [vmem:[%s2512_s0 + $0xc] sm:$0xf] }
  0x21   :  { %v2204_v12 = vld [vmem:[#allocation4] ss:$0 sm:$0xff]  ;;  %v1649_v37 = vld [vmem:[%s2512_s0 + $0x4] sm:$0xf]  ;;  %v1661_v38 = vld [vmem:[%s2512_s0 + $0x1c] sm:$0xf] }
  0x22   :  { %1656 = vmatmul.msk.bf16.vlgmr.msra.gmra.mxu0 %vm160_vm0, %v1655_v2  ;;  %1648 = vmatmul.msk.bf16.vlgmr.msra.gmra.mxu3 %vm160_vm0, %v153_v3 }
  0x23   :  { %328 = vmatpush.msrb.mxu0 %v2168_v1  ;;  %228 = vmatpush.bf16.msrb.mxu3 %v1722_v0 }
  0x24   :  { %285 = vmatpush.bf16.msrb.mxu2 %v1722_v0  ;;  %266 = vmatpush.bf16.msrb.mxu1 %v1722_v0 }
  0x25   :  { %329 = vmatpush.msrb.mxu0 %v2179_v4  ;;  %1650 = vmatmul.msk.bf16.vlgmr.msra.gmra.mxu1 %vm160_vm0, %v1649_v37 }
  0x27   :  { %304 = vmatpush.bf16.msra.mxu3 %v1722_v0  ;;  %330 = vmatpush.msrb.mxu0 %v2187_v5 }
  0x28   :  { %687 = vmatpush.msra.mxu1 %v2168_v1 }
  0x29   :  { %331 = vmatpush.msrb.mxu0 %v2193_v6 }
  0x2a   :  { %688 = vmatpush.msra.mxu1 %v2179_v4 }
  0x2b   :  { %616 = vmatpush.msra.mxu0 %v2168_v1 }
  0x2c   :  { %689 = vmatpush.msra.mxu1 %v2187_v5 }
  0x2d   :  { %617 = vmatpush.msra.mxu0 %v2179_v4 }
  0x2e   :  { %690 = vmatpush.msra.mxu1 %v2193_v6 }
  0x2f   :  { %618 = vmatpush.msra.mxu0 %v2187_v5 }
  0x31   :  { %619 = vmatpush.msra.mxu0 %v2193_v6 }
  0x32   :  { %332 = vmatmul.f32.vlgmr.msrb.gmra.mxu0 %v2067_v7  ;;  %1654 = vmatmul.msk.bf16.vlgmr.msrb.gmra.mxu3 %vm160_vm0, %v1653_v36 }
  0x33   :  { %403 = vmatpush.msrb.mxu3 %v2168_v1 }
  0x35   :  { %404 = vmatpush.msrb.mxu3 %v2179_v4 }
  0x37   :  { %405 = vmatpush.msrb.mxu3 %v2187_v5 }
  0x39   :  { %406 = vmatpush.msrb.mxu3 %v2193_v6 }
  0x42   :  { %1662 = vmatmul.msk.bf16.vlgmr.msra.gmra.mxu3 %vm160_vm0, %v1661_v38 }
  0x43   :  { %545 = vmatpush.msra.mxu3 %v2168_v1 }
  0x45   :  { %546 = vmatpush.msra.mxu3 %v2179_v4 }
  0x47   :  { %547 = vmatpush.msra.mxu3 %v2187_v5 }
  0x49   :  { %548 = vmatpush.msra.mxu3 %v2193_v6 }
  0x9f   :  { %v2202_v8 = vpop.f32.mrf.mxu0 }
  0xa2   :  { %v192_v41 = vpop.f32.mrf.mxu1 }
  0xa5   :  { %v173_v9 = vpop.f32.mrf.mxu3 }
  0xa7   :  { %v251_v10 = vpop.f32.mrf.mxu0 }
  0xaa   :  { %v194_v43 = vpop.f32.mrf.mxu1 }
  0xad   :  { %v175_v11 = vpop.f32.mrf.mxu3 }
  0xaf   :  { %v333_v13 = vpop.f32.mrf.mxu0 }
  0xb0   :  { %v336_v14 = vadd.f32 %v333_v13, %v173_v9 }
  0xb2   :  { %v340_v15 = vadd.f32 %v2204_v12, %v336_v14  ;;  %v1651_v14 = vld [vmem:[%s2512_s0 + $0x8] sm:$0xf] }
  0xb3   :  { %1652 = vmatmul.msk.bf16.vlgmr.msra.gmra.mxu2 %vm160_vm0, %v1651_v14 }
  0xb4   :  { %1747 = vtanh.f32 %v340_v15  ;;  %v1663_v17 = vmul.f32 -1.442695, %v340_v15  ;;  %474 = vmatpush.msra.mxu2 %v2168_v1  ;;  %v1659_v15 = vld [vmem:[%s2512_s0 + $0x18] sm:$0xf] }
  0xb5   :  { %v2241_v42 = vpop.f32.mrf.mxu3 }
  0xb6   :  { %1749 = vpow2.f32 %v1663_v17  ;;  %475 = vmatpush.msra.mxu2 %v2179_v4 }
  0xb8   :  { %476 = vmatpush.msra.mxu2 %v2187_v5 }
  0xba   :  { %v1748_v16 = vpop.eup %1747  ;;  %477 = vmatpush.msra.mxu2 %v2193_v6 }
  0xbb   :  { %363 = vrot.lane.b32.xlu0 %v1748_v16, %s2057_s16 }
  0xbc   :  { %v1750_v18 = vpop.eup %1749 }
  0xbd   :  { %v344_v19 = vadd.f32 1.0, %v1750_v18  ;;  %v232_v44 = vpop.f32.mrf.mxu3 }
  0xbf   :  { %1751 = vrcp.f32 %v344_v19  ;;  %v356_v25 = vand.u32 2147483648, %v344_v19  ;;  %vm350_vm2 = vweird.f32 %v344_v19  ;;  %v354_v26 = vand.u32 2147483647, %v344_v19 }
  0xc1   :  { %v357_v28 = vor.u32 1.1754944e-38, %v356_v25  ;;  %vm355_vm4 = vcmp.eq.f32.partialorder %v354_v26, 8.507059e+37 }
  0xc3   :  { %1660 = vmatmul.msk.bf16.vlgmr.msrb.gmra.mxu2 %vm160_vm0, %v1659_v15 }
  0xc4   :  { %758 = vmatpush.msrb.mxu2 %v2168_v1 }
  0xc5   :  { %v1752_v20 = vpop.eup %1751  ;;  %v2244_v46 = vpop.f32.mrf.mxu3 }
  0xc6   :  { %v346_v21 = vmul.f32 %v1752_v20, %v344_v19  ;;  %vm351_vm1 = vweird.f32 %v1752_v20  ;;  %759 = vmatpush.msrb.mxu2 %v2179_v4 }
  0xc7   :  { %vm352_vm3 = vmor %vm350_vm2, %vm351_vm1 }
  0xc8   :  { %v347_v22 = vsub.f32 1.0, %v346_v21  ;;  %760 = vmatpush.msrb.mxu2 %v2187_v5 }
  0xca   :  { %v348_v23 = vmul.f32 %v1752_v20, %v347_v22  ;;  %761 = vmatpush.msrb.mxu2 %v2193_v6 }
  0xcc   :  { %v349_v24 = vadd.f32 %v1752_v20, %v348_v23 }
  0xcd   :  { %v308_v47 = vpop.f32.mrf.mxu3 }
  0xce   :  { %v353_v27 = vsel %vm352_vm3, %v1752_v20, %v349_v24 }
  0xcf   :  { %v358_v30 = vsel %vm355_vm4, %v357_v28, %v353_v27 }
  0xd0   :  { %v361_v32 = vmul.f32 0.0, %v358_v30 }
 0x12d   :  { %v364_v29 = vpop.permute.xlu0 %363 }
 0x12e   :  { %v366_v31 = vmul.f32 %v364_v29, %v358_v30 }
 0x130   :  { %368 = vrot.lane.b32.xlu0 %v366_v31, %s2068_s2 }
 0x136   :  { %v211_v18 = vpop.f32.mrf.mxu2 }
 0x13e   :  { %v213_v19 = vpop.f32.mrf.mxu2 }
 0x146   :  { %v2276_v21 = vpop.f32.mrf.mxu2 }
 0x1a2   :  { %v369_v33 = vpop.permute.xlu0 %368 }
 0x1a3   :  { %v2209_v34 = vadd.f32 %v369_v33, %v361_v32 }
 0x1a5   :  { %1753 = vtanh.f32 %v2209_v34 }
 0x1ab   :  { %v1754_v35 = vpop.eup %1753 }
 0x1ac   :  { %374 = vrot.lane.b32.xlu1 %v1754_v35, %s2057_s16 }
 0x21e   :  { %v375_v39 = vpop.permute.xlu1 %374 }
 0x21f   :  { %v2237_v40 = vmul.f32 %v375_v39, %v358_v30 }
 0x221   :  { %387 = vrot.lane.b32.xlu1 %v2237_v40, %s2068_s2 }
 0x293   :  { %v388_v45 = vpop.permute.xlu1 %387 }
 0x294   :  { %1664 = vmatmul.msk.f32.vlgmr.msrb.gmra.mxu3 %vm312_vm5, %v388_v45 }
 0x295   :  { %829 = vmatpush.msrb.mxu3 %v2168_v1  ;;  %v289_v1 = vpop.f32.mrf.mxu2 }
 0x296   :  { %v378_v1 = vpack.c.bf16 %v2237_v40, %v2237_v40 }
 0x297   :  { %830 = vmatpush.msrb.mxu3 %v2179_v4 }
 0x299   :  { %831 = vmatpush.msrb.mxu3 %v2187_v5 }
 0x29b   :  { %832 = vmatpush.msrb.mxu3 %v2193_v6 }
 0x317   :  { %v408_v48 = vpop.f32.mrf.mxu3 }
 0x318   :  { %v411_v49 = vadd.f32 %v408_v48, %v192_v41 }
 0x31a   :  { %v412_v50 = vadd.f32 %v2204_v12, %v411_v49 }
 0x31c   :  { %1755 = vtanh.f32 %v412_v50  ;;  %v1665_v52 = vmul.f32 -1.442695, %v412_v50 }
 0x31e   :  { %1757 = vpow2.f32 %v1665_v52 }
 0x322   :  { %v1756_v51 = vpop.eup %1755 }
 0x323   :  { %435 = vrot.lane.b32.xlu2 %v1756_v51, %s2057_s16 }
 0x324   :  { %v1758_v53 = vpop.eup %1757 }
 0x325   :  { %v416_v54 = vadd.f32 1.0, %v1758_v53 }
 0x327   :  { %1759 = vrcp.f32 %v416_v54  ;;  %v428_v60 = vand.u32 2147483648, %v416_v54  ;;  %vm422_vm7 = vweird.f32 %v416_v54  ;;  %v426_v61 = vand.u32 2147483647, %v416_v54 }
 0x329   :  { %v429_v63 = vor.u32 1.1754944e-38, %v428_v60  ;;  %vm427_vm9 = vcmp.eq.f32.partialorder %v426_v61, 8.507059e+37 }
 0x32d   :  { %v1760_v55 = vpop.eup %1759 }
 0x32e   :  { %v418_v56 = vmul.f32 %v1760_v55, %v416_v54  ;;  %vm423_vm6 = vweird.f32 %v1760_v55 }
 0x32f   :  { %vm424_vm8 = vmor %vm422_vm7, %vm423_vm6 }
 0x330   :  { %v419_v57 = vsub.f32 1.0, %v418_v56 }
 0x332   :  { %v420_v58 = vmul.f32 %v1760_v55, %v419_v57 }
 0x334   :  { %v421_v59 = vadd.f32 %v1760_v55, %v420_v58 }
 0x336   :  { %v425_v62 = vsel %vm424_vm8, %v1760_v55, %v421_v59  ;;  %vm383_vm8 = vcmask 257024  }
 0x337   :  { %v430_v2 = vsel %vm427_vm9, %v429_v63, %v425_v62 }
 0x338   :  { %v433_v9 = vmul.f32 %v430_v2, %v2209_v34 }
 0x37d   :  { %v436_v0 = vpop.permute.xlu2 %435 }
 0x37e   :  { %v438_v3 = vmul.f32 %v436_v0, %v430_v2 }
 0x380   :  { %440 = vrot.lane.b32.xlu2 %v438_v3, %s2068_s2 }
 0x3da   :  { %v441_v10 = vpop.permute.xlu2 %440 }
 0x3db   :  { %v443_v11 = vadd.f32 %v441_v10, %v433_v9 }
 0x3dd   :  { %1761 = vtanh.f32 %v443_v11 }
 0x3e3   :  { %v1762_v13 = vpop.eup %1761 }
 0x3e4   :  { %446 = vrot.lane.b32.xlu0 %v1762_v13, %s2057_s16 }
 0x456   :  { %v447_v16 = vpop.permute.xlu0 %446 }
 0x457   :  { %v2271_v17 = vmul.f32 %v447_v16, %v430_v2 }
 0x459   :  { %458 = vrot.lane.b32.xlu1 %v2271_v17, %s2068_s2 }
 0x4cb   :  { %v459_v20 = vpop.permute.xlu1 %458 }
 0x4cc   :  { %1666 = vmatmul.msk.f32.vlgmr.msra.gmra.mxu2 %vm312_vm5, %v459_v20 }
 0x54f   :  { %v479_v22 = vpop.f32.mrf.mxu2 }
 0x550   :  { %v482_v4 = vadd.f32 %v479_v22, %v211_v18 }
 0x552   :  { %v483_v5 = vadd.f32 %v2204_v12, %v482_v4 }
 0x554   :  { %1763 = vtanh.f32 %v483_v5  ;;  %v1667_v23 = vmul.f32 -1.442695, %v483_v5 }
 0x556   :  { %1765 = vpow2.f32 %v1667_v23 }
 0x55a   :  { %v1764_v6 = vpop.eup %1763 }
 0x55b   :  { %506 = vrot.lane.b32.xlu2 %v1764_v6, %s2057_s16 }
 0x55c   :  { %v1766_v24 = vpop.eup %1765 }
 0x55d   :  { %v487_v25 = vadd.f32 1.0, %v1766_v24 }
 0x55f   :  { %1767 = vrcp.f32 %v487_v25  ;;  %v499_v31 = vand.u32 2147483648, %v487_v25  ;;  %vm493_vm11 = vweird.f32 %v487_v25  ;;  %v497_v32 = vand.u32 2147483647, %v487_v25 }
 0x561   :  { %v500_v34 = vor.u32 1.1754944e-38, %v499_v31  ;;  %vm498_vm13 = vcmp.eq.f32.partialorder %v497_v32, 8.507059e+37 }
 0x565   :  { %v1768_v26 = vpop.eup %1767 }
 0x566   :  { %v489_v27 = vmul.f32 %v1768_v26, %v487_v25  ;;  %vm494_vm10 = vweird.f32 %v1768_v26 }
 0x567   :  { %vm495_vm12 = vmor %vm493_vm11, %vm494_vm10 }
 0x568   :  { %v490_v28 = vsub.f32 1.0, %v489_v27 }
 0x56a   :  { %v491_v29 = vmul.f32 %v1768_v26, %v490_v28 }
 0x56c   :  { %v492_v30 = vadd.f32 %v1768_v26, %v491_v29 }
 0x56e   :  { %v496_v33 = vsel %vm495_vm12, %v1768_v26, %v492_v30 }
 0x56f   :  { %v501_v36 = vsel %vm498_vm13, %v500_v34, %v496_v33  ;;  %v450_v33 = vpack.c.bf16 %v2271_v17, %v2271_v17  ;;  %v1724_v34 = vld [vmem:[#allocation6 + $0x8] sm:$0xff] }
 0x570   :  { %v504_v38 = vmul.f32 %v501_v36, %v443_v11  ;;  %949 = vmatpush.bf16.msrb.mxu0 %v1724_v34 }
 0x5b5   :  { %v507_v35 = vpop.permute.xlu2 %506 }
 0x5b6   :  { %v509_v37 = vmul.f32 %v507_v35, %v501_v36  ;;  %v1723_v35 = vld [vmem:[#allocation6] sm:$0xff] }
 0x5b7   :  { %950 = vmatpush.bf16.msrb.mxu0 %v1723_v35 }
 0x5b8   :  { %511 = vrot.lane.b32.xlu0 %v509_v37, %s2068_s2 }
 0x62a   :  { %v512_v39 = vpop.permute.xlu0 %511 }
 0x62b   :  { %v514_v41 = vadd.f32 %v512_v39, %v504_v38 }
 0x62d   :  { %1769 = vtanh.f32 %v514_v41 }
 0x633   :  { %v1770_v43 = vpop.eup %1769 }
 0x634   :  { %517 = vrot.lane.b32.xlu1 %v1770_v43, %s2057_s16  ;;  %v1657_v43 = vld [vmem:[%s2512_s0 + $0x14] sm:$0xf] }
 0x635   :  { %1658 = vmatmul.msk.bf16.vlgmr.msrb.gmra.mxu1 %vm160_vm0, %v1657_v43 }
 0x6a6   :  { %v518_v44 = vpop.permute.xlu1 %517 }
 0x6a7   :  { %v2282_v45 = vmul.f32 %v518_v44, %v501_v36 }
 0x6a9   :  { %529 = vrot.lane.b32.xlu2 %v2282_v45, %s2068_s2 }
 0x703   :  { %v530_v47 = vpop.permute.xlu2 %529 }
 0x704   :  { %1668 = vmatmul.msk.f32.vlgmr.msra.gmra.mxu3 %vm312_vm5, %v530_v47 }
 0x787   :  { %v550_v48 = vpop.f32.mrf.mxu3 }
 0x788   :  { %v553_v49 = vadd.f32 %v550_v48, %v2241_v42  ;;  %v2325_v48 = vld [vmem:[%s2517_s5 + $0x18] sm:$0xff] }
 0x789   :  { %993 = vmatpush.msrb.mxu1 %v2325_v48  ;;  %1061 = vmatpush.msra.mxu2 %v2325_v48 }
 0x78a   :  { %v554_v50 = vadd.f32 %v2204_v12, %v553_v49  ;;  %v2330_v49 = vld [vmem:[%s2517_s5 + $0x10] sm:$0xff]  ;;  %1126 = vmatpush.msra.mxu3 %v2325_v48 }
 0x78b   :  { %994 = vmatpush.msrb.mxu1 %v2330_v49  ;;  %1062 = vmatpush.msra.mxu2 %v2330_v49 }
 0x78c   :  { %1771 = vtanh.f32 %v554_v50  ;;  %v1669_v52 = vmul.f32 -1.442695, %v554_v50  ;;  %v2337_v50 = vld [vmem:[%s2517_s5 + $0x8] sm:$0xff]  ;;  %1127 = vmatpush.msra.mxu3 %v2330_v49 }
 0x78d   :  { %995 = vmatpush.msrb.mxu1 %v2337_v50  ;;  %1063 = vmatpush.msra.mxu2 %v2337_v50 }
 0x78e   :  { %1773 = vpow2.f32 %v1669_v52  ;;  %1128 = vmatpush.msra.mxu3 %v2337_v50 }
 0x792   :  { %v1772_v51 = vpop.eup %1771 }
 0x793   :  { %577 = vrot.lane.b32.xlu0 %v1772_v51, %s2057_s16  ;;  %v2345_v51 = vld [vmem:[%s2517_s5] sm:$0xff] }
 0x794   :  { %v1774_v53 = vpop.eup %1773  ;;  %996 = vmatpush.msrb.mxu1 %v2345_v51  ;;  %1064 = vmatpush.msra.mxu2 %v2345_v51 }
 0x795   :  { %v558_v54 = vadd.f32 1.0, %v1774_v53  ;;  %1129 = vmatpush.msra.mxu3 %v2345_v51  ;;  %v268_v53 = vpop.f32.mrf.mxu1 }
 0x797   :  { %1775 = vrcp.f32 %v558_v54  ;;  %v570_v60 = vand.u32 2147483648, %v558_v54  ;;  %vm564_vm15 = vweird.f32 %v558_v54  ;;  %v568_v42 = vand.u32 2147483647, %v558_v54 }
 0x799   :  { %v571_v62 = vor.u32 1.1754944e-38, %v570_v60  ;;  %vm569_vm2 = vcmp.eq.f32.partialorder %v568_v42, 8.507059e+37 }
 0x79d   :  { %v1776_v55 = vpop.eup %1775 }
 0x79e   :  { %v560_v56 = vmul.f32 %v1776_v55, %v558_v54  ;;  %vm565_vm14 = vweird.f32 %v1776_v55  ;;  %v270_v54 = vpop.f32.mrf.mxu1 }
 0x79f   :  { %vm566_vm1 = vmor %vm564_vm15, %vm565_vm14 }
 0x7a0   :  { %v561_v57 = vsub.f32 1.0, %v560_v56 }
 0x7a2   :  { %v562_v58 = vmul.f32 %v1776_v55, %v561_v57 }
 0x7a4   :  { %v563_v59 = vadd.f32 %v1776_v55, %v562_v58  ;;  %v2368_v58 = vld [vmem:[%s2518_s6] ss:$0 sm:$0xff] }
 0x7a6   :  { %v567_v61 = vsel %vm566_vm1, %v1776_v55, %v563_v59 }
 0x7a7   :  { %v572_v0 = vsel %vm569_vm2, %v571_v62, %v567_v61 }
 0x7a8   :  { %v575_v3 = vmul.f32 %v572_v0, %v514_v41 }
 0x805   :  { %v578_v63 = vpop.permute.xlu0 %577 }
 0x806   :  { %v580_v2 = vmul.f32 %v578_v63, %v572_v0 }
 0x808   :  { %582 = vrot.lane.b32.xlu1 %v580_v2, %s2068_s2 }
 0x87a   :  { %v583_v9 = vpop.permute.xlu1 %582 }
 0x87b   :  { %v585_v10 = vadd.f32 %v583_v9, %v575_v3 }
 0x87d   :  { %1777 = vtanh.f32 %v585_v10 }
 0x883   :  { %v1778_v11 = vpop.eup %1777 }
 0x884   :  { %588 = vrot.lane.b32.xlu2 %v1778_v11, %s2057_s16 }
 0x8de   :  { %v589_v13 = vpop.permute.xlu2 %588 }
 0x8df   :  { %v2292_v14 = vmul.f32 %v589_v13, %v572_v0 }
 0x8e1   :  { %600 = vrot.lane.b32.xlu0 %v2292_v14, %s2068_s2 }
 0x953   :  { %v601_v15 = vpop.permute.xlu0 %600 }
 0x954   :  { %1670 = vmatmul.msk.f32.vlgmr.msra.gmra.mxu0 %vm312_vm5, %v601_v15 }
 0x9d1   :  { %v621_v16 = vpop.f32.mrf.mxu0 }
 0x9d2   :  { %v624_v18 = vadd.f32 %v621_v16, %v2202_v8 }
 0x9d4   :  { %v625_v19 = vadd.f32 %v2204_v12, %v624_v18 }
 0x9d6   :  { %1779 = vtanh.f32 %v625_v19  ;;  %v1671_v22 = vmul.f32 -1.442695, %v625_v19 }
 0x9d8   :  { %1781 = vpow2.f32 %v1671_v22 }
 0x9dc   :  { %v1780_v20 = vpop.eup %1779 }
 0x9dd   :  { %648 = vrot.lane.b32.xlu1 %v1780_v20, %s2057_s16 }
 0x9de   :  { %v1782_v4 = vpop.eup %1781 }
 0x9df   :  { %v629_v5 = vadd.f32 1.0, %v1782_v4 }
 0x9e1   :  { %1783 = vrcp.f32 %v629_v5  ;;  %v641_v26 = vand.u32 2147483648, %v629_v5  ;;  %vm635_vm4 = vweird.f32 %v629_v5  ;;  %v639_v27 = vand.u32 2147483647, %v629_v5 }
 0x9e3   :  { %v642_v29 = vor.u32 1.1754944e-38, %v641_v26  ;;  %vm640_vm7 = vcmp.eq.f32.partialorder %v639_v27, 8.507059e+37 }
 0x9e5   :  { %380 = vrot.lane.b32.xlu1 %v378_v1, %s2068_s2 }
 0x9e7   :  { %v1784_v6 = vpop.eup %1783 }
 0x9e8   :  { %v631_v23 = vmul.f32 %v1784_v6, %v629_v5  ;;  %vm636_vm3 = vweird.f32 %v1784_v6 }
 0x9e9   :  { %vm637_vm6 = vmor %vm635_vm4, %vm636_vm3 }
 0x9ea   :  { %v632_v24 = vsub.f32 1.0, %v631_v23 }
 0x9ec   :  { %v633_v8 = vmul.f32 %v1784_v6, %v632_v24 }
 0x9ee   :  { %v634_v25 = vadd.f32 %v1784_v6, %v633_v8 }
 0x9f0   :  { %v638_v28 = vsel %vm637_vm6, %v1784_v6, %v634_v25 }
 0x9f1   :  { %v643_v30 = vsel %vm640_vm7, %v642_v29, %v638_v28 }
 0x9f2   :  { %v646_v36 = vmul.f32 %v643_v30, %v585_v10 }
 0xa4f   :  { %v649_v40 = vpop.permute.xlu1 %648 }
 0xa50   :  { %v651_v31 = vmul.f32 %v649_v40, %v643_v30 }
 0xa52   :  { %653 = vrot.lane.b32.xlu2 %v651_v31, %s2068_s2 }
 0xa57   :  { %v381_v32 = vpop.permute.xlu1 %380 }
 0xa58   :  { %384 = vst.msk [vmem:[#allocation3] sm:$0xf] %vm383_vm8, %v381_v32 }
 0xa5a   :  { %452 = vrot.lane.b32.xlu2 %v450_v33, %s2068_s2 }
 0xaac   :  { %v654_v37 = vpop.permute.xlu2 %653 }
 0xaad   :  { %v2308_v38 = vadd.f32 %v654_v37, %v646_v36 }
 0xaaf   :  { %1785 = vtanh.f32 %v2308_v38 }
 0xab4   :  { %v453_v39 = vpop.permute.xlu2 %452 }
 0xab5   :  { %v1786_v41 = vpop.eup %1785  ;;  %455 = vst.msk [vmem:[#allocation3 + $0x4] sm:$0xf] %vm383_vm8, %v453_v39 }
 0xab6   :  { %659 = vrot.lane.b32.xlu0 %v1786_v41, %s2057_s16 }
 0xabc   :  { %v1725_v17 = vld [vmem:[#allocation3] sm:$0xff] }
 0xabd   :  { %1702 = vmatmul.msk.bf16.vlgmr.msrb.gmra.mxu0 %vm312_vm5, %v1725_v17 }
 0xb28   :  { %v660_v44 = vpop.permute.xlu0 %659 }
 0xb29   :  { %v2318_v47 = vmul.f32 %v660_v44, %v643_v30 }
 0xb2b   :  { %671 = vrot.lane.b32.xlu0 %v2318_v47, %s2068_s2 }
 0xb9d   :  { %v672_v52 = vpop.permute.xlu0 %671 }
 0xb9e   :  { %1672 = vmatmul.msk.f32.vlgmr.msra.gmra.mxu1 %vm312_vm5, %v672_v52 }
 0xb9f   :  { %1191 = vmatpush.msra.mxu1 %v2325_v48 }
 0xba1   :  { %1192 = vmatpush.msra.mxu1 %v2330_v49 }
 0xba3   :  { %1193 = vmatpush.msra.mxu1 %v2337_v50 }
 0xba5   :  { %1194 = vmatpush.msra.mxu1 %v2345_v51 }
 0xba6   :  { %997 = vmatmul.f32.vlgmr.msrb.gmra.mxu1 %v2067_v7  ;;  %v952_v7 = vpop.f32.mrf.mxu0 }
 0xba7   :  { %1386 = vmatpush.msrb.mxu1 %v2325_v48 }
 0xba9   :  { %1387 = vmatpush.msrb.mxu1 %v2330_v49 }
 0xbab   :  { %1388 = vmatpush.msrb.mxu1 %v2337_v50 }
 0xbad   :  { %1389 = vmatpush.msrb.mxu1 %v2345_v51 }
 0xc1b   :  { %v692_v55 = vpop.f32.mrf.mxu1 }
 0xc1c   :  { %v695_v56 = vadd.f32 %v692_v55, %v268_v53 }
 0xc1e   :  { %v696_v57 = vadd.f32 %v2204_v12, %v695_v56 }
 0xc20   :  { %1787 = vtanh.f32 %v696_v57  ;;  %v1673_v3 = vmul.f32 -1.442695, %v696_v57 }
 0xc23   :  { %v998_v59 = vpop.f32.mrf.mxu1 }
 0xc24   :  { %v1001_v60 = vadd.f32 %v998_v59, %v952_v7  ;;  %v954_v7 = vpop.f32.mrf.mxu0 }
 0xc26   :  { %v1788_v42 = vpop.eup %1787  ;;  %v1005_v61 = vadd.f32 %v2368_v58, %v1001_v60 }
 0xc27   :  { %719 = vrot.lane.b32.xlu1 %v1788_v42, %s2057_s16 }
 0xc28   :  { %1789 = vtanh.f32 %v1005_v61  ;;  %v1706_v63 = vmul.f32 -1.442695, %v1005_v61 }
 0xc2a   :  { %1791 = vpow2.f32 %v1706_v63 }
 0xc2e   :  { %v1790_v62 = vpop.eup %1789 }
 0xc2f   :  { %1028 = vrot.lane.b32.xlu2 %v1790_v62, %s2057_s16 }
 0xc30   :  { %v1792_v0 = vpop.eup %1791 }
 0xc31   :  { %v1009_v2 = vadd.f32 1.0, %v1792_v0 }
 0xc33   :  { %1793 = vrcp.f32 %v1009_v2  ;;  %v1021_v20 = vand.u32 2147483648, %v1009_v2  ;;  %vm1015_vm9 = vweird.f32 %v1009_v2  ;;  %v1019_v1 = vand.u32 2147483647, %v1009_v2 }
 0xc34   :  { %1795 = vpow2.f32 %v1673_v3 }
 0xc35   :  { %v1022_v5 = vor.u32 1.1754944e-38, %v1021_v20  ;;  %vm1020_vm11 = vcmp.eq.f32.partialorder %v1019_v1, 8.507059e+37 }
 0xc39   :  { %v1794_v9 = vpop.eup %1793 }
 0xc3a   :  { %v1796_v10 = vpop.eup %1795  ;;  %v1011_v11 = vmul.f32 %v1794_v9, %v1009_v2  ;;  %vm1016_vm0 = vweird.f32 %v1794_v9 }
 0xc3b   :  { %v700_v13 = vadd.f32 1.0, %v1796_v10  ;;  %vm1017_vm10 = vmor %vm1015_vm9, %vm1016_vm0 }
 0xc3c   :  { %v1012_v15 = vsub.f32 1.0, %v1011_v11 }
 0xc3d   :  { %1797 = vrcp.f32 %v700_v13  ;;  %v712_v27 = vand.u32 2147483648, %v700_v13  ;;  %vm706_vm13 = vweird.f32 %v700_v13  ;;  %v710_v28 = vand.u32 2147483647, %v700_v13 }
 0xc3e   :  { %v1013_v16 = vmul.f32 %v1794_v9, %v1012_v15 }
 0xc3f   :  { %v713_v40 = vor.u32 1.1754944e-38, %v712_v27  ;;  %vm711_vm15 = vcmp.eq.f32.partialorder %v710_v28, 8.507059e+37 }
 0xc40   :  { %v1014_v18 = vadd.f32 %v1794_v9, %v1013_v16 }
 0xc42   :  { %v1018_v22 = vsel %vm1017_vm10, %v1794_v9, %v1014_v18 }
 0xc43   :  { %v1798_v19 = vpop.eup %1797  ;;  %v1023_v23 = vsel %vm1020_vm11, %v1022_v5, %v1018_v22 }
 0xc44   :  { %v702_v4 = vmul.f32 %v1798_v19, %v700_v13  ;;  %vm707_vm12 = vweird.f32 %v1798_v19  ;;  %v1026_v33 = vmul.f32 0.0, %v1023_v23 }
 0xc45   :  { %vm708_vm14 = vmor %vm706_vm13, %vm707_vm12 }
 0xc46   :  { %v703_v8 = vsub.f32 1.0, %v702_v4 }
 0xc48   :  { %v704_v25 = vmul.f32 %v1798_v19, %v703_v8 }
 0xc4a   :  { %v705_v26 = vadd.f32 %v1798_v19, %v704_v25 }
 0xc4c   :  { %v709_v29 = vsel %vm708_vm14, %v1798_v19, %v705_v26 }
 0xc4d   :  { %v714_v31 = vsel %vm711_vm15, %v713_v40, %v709_v29 }
 0xc4e   :  { %v717_v37 = vmul.f32 %v714_v31, %v2308_v38 }
 0xc89   :  { %v1029_v6 = vpop.permute.xlu2 %1028 }
 0xc8a   :  { %v1031_v24 = vmul.f32 %v1029_v6, %v1023_v23 }
 0xc8c   :  { %1033 = vrot.lane.b32.xlu1 %v1031_v24, %s2068_s2 }
 0xc99   :  { %v720_v30 = vpop.permute.xlu1 %719 }
 0xc9a   :  { %v722_v32 = vmul.f32 %v720_v30, %v714_v31 }
 0xc9c   :  { %724 = vrot.lane.b32.xlu0 %v722_v32, %s2068_s2 }
 0xcfe   :  { %v1034_v34 = vpop.permute.xlu1 %1033 }
 0xcff   :  { %v2375_v35 = vadd.f32 %v1034_v34, %v1026_v33 }
 0xd01   :  { %1799 = vtanh.f32 %v2375_v35 }
 0xd07   :  { %v1800_v36 = vpop.eup %1799 }
 0xd08   :  { %1039 = vrot.lane.b32.xlu0 %v1800_v36, %s2057_s16  ;;  %v521_v36 = vpack.c.bf16 %v2282_v45, %v2282_v45 }
 0xd0e   :  { %v725_v39 = vpop.permute.xlu0 %724 }
 0xd0f   :  { %v2380_v41 = vadd.f32 %v725_v39, %v717_v37 }
 0xd11   :  { %1801 = vtanh.f32 %v2380_v41 }
 0xd17   :  { %v1802_v17 = vpop.eup %1801 }
 0xd18   :  { %730 = vrot.lane.b32.xlu2 %v1802_v17, %s2057_s16 }
 0xd72   :  { %v731_v43 = vpop.permute.xlu2 %730 }
 0xd73   :  { %v2384_v44 = vmul.f32 %v731_v43, %v714_v31 }
 0xd75   :  { %742 = vrot.lane.b32.xlu1 %v2384_v44, %s2068_s2 }
 0xd7a   :  { %v1040_v52 = vpop.permute.xlu0 %1039 }
 0xd7b   :  { %v1042_v53 = vmul.f32 %v1040_v52, %v1023_v23 }
 0xd7d   :  { %1045 = vrot.lane.b32.xlu2 %v1042_v53, %s2068_s2 }
 0xdd7   :  { %v1046_v38 = vpop.permute.xlu2 %1045 }
 0xde7   :  { %v743_v54 = vpop.permute.xlu1 %742 }
 0xde8   :  { %1674 = vmatmul.msk.f32.vlgmr.msrb.gmra.mxu2 %vm312_vm5, %v743_v54 }
 0xde9   :  { %1256 = vmatpush.msrb.mxu2 %v2325_v48 }
 0xdeb   :  { %1257 = vmatpush.msrb.mxu2 %v2330_v49 }
 0xded   :  { %1258 = vmatpush.msrb.mxu2 %v2337_v50 }
 0xdef   :  { %1259 = vmatpush.msrb.mxu2 %v2345_v51 }
 0xdf0   :  { %1707 = vmatmul.msk.f32.vlgmr.msra.gmra.mxu2 %vm312_vm5, %v1046_v38 }
 0xdf1   :  { %1451 = vmatpush.msra.mxu2 %v2325_v48 }
 0xdf3   :  { %1452 = vmatpush.msra.mxu2 %v2330_v49 }
 0xdf5   :  { %1453 = vmatpush.msra.mxu2 %v2337_v50 }
 0xdf7   :  { %1454 = vmatpush.msra.mxu2 %v2345_v51 }
 0xe6b   :  { %v763_v55 = vpop.f32.mrf.mxu2 }
 0xe6c   :  { %v766_v56 = vadd.f32 %v763_v55, %v2276_v21 }
 0xe6e   :  { %v767_v57 = vadd.f32 %v2204_v12, %v766_v56 }
 0xe70   :  { %1803 = vtanh.f32 %v767_v57  ;;  %v1675_v63 = vmul.f32 -1.442695, %v767_v57 }
 0xe73   :  { %v1066_v59 = vpop.f32.mrf.mxu2 }
 0xe74   :  { %v1069_v60 = vadd.f32 %v1066_v59, %v954_v7 }
 0xe76   :  { %v1804_v42 = vpop.eup %1803  ;;  %v1070_v61 = vadd.f32 %v2368_v58, %v1069_v60 }
 0xe77   :  { %790 = vrot.lane.b32.xlu0 %v1804_v42, %s2057_s16 }
 0xe78   :  { %1805 = vtanh.f32 %v1070_v61  ;;  %v1708_v0 = vmul.f32 -1.442695, %v1070_v61 }
 0xe79   :  { %1807 = vpow2.f32 %v1675_v63 }
 0xe7a   :  { %1809 = vpow2.f32 %v1708_v0 }
 0xe7e   :  { %v1806_v62 = vpop.eup %1805 }
 0xe7f   :  { %1093 = vrot.lane.b32.xlu1 %v1806_v62, %s2057_s16  ;;  %v1808_v2 = vpop.eup %1807 }
 0xe80   :  { %v771_v21 = vadd.f32 1.0, %v1808_v2  ;;  %v1810_v12 = vpop.eup %1809 }
 0xe81   :  { %v1074_v3 = vadd.f32 1.0, %v1810_v12 }
 0xe82   :  { %1811 = vrcp.f32 %v771_v21  ;;  %v783_v20 = vand.u32 2147483648, %v771_v21  ;;  %vm777_vm2 = vweird.f32 %v771_v21  ;;  %v781_v1 = vand.u32 2147483647, %v771_v21 }
 0xe83   :  { %1813 = vrcp.f32 %v1074_v3  ;;  %v1086_v25 = vand.u32 2147483648, %v1074_v3  ;;  %vm1080_vm7 = vweird.f32 %v1074_v3  ;;  %v1084_v26 = vand.u32 2147483647, %v1074_v3 }
 0xe84   :  { %v784_v5 = vor.u32 1.1754944e-38, %v783_v20  ;;  %vm782_vm4 = vcmp.eq.f32.partialorder %v781_v1, 8.507059e+37 }
 0xe85   :  { %v1087_v28 = vor.u32 1.1754944e-38, %v1086_v25  ;;  %vm1085_vm9 = vcmp.eq.f32.partialorder %v1084_v26, 8.507059e+37 }
 0xe88   :  { %v1812_v9 = vpop.eup %1811 }
 0xe89   :  { %v773_v10 = vmul.f32 %v1812_v9, %v771_v21  ;;  %v1814_v13 = vpop.eup %1813  ;;  %vm778_vm1 = vweird.f32 %v1812_v9 }
 0xe8a   :  { %v1076_v16 = vmul.f32 %v1814_v13, %v1074_v3  ;;  %vm779_vm3 = vmor %vm777_vm2, %vm778_vm1  ;;  %vm1081_vm6 = vweird.f32 %v1814_v13 }
 0xe8b   :  { %v774_v11 = vsub.f32 1.0, %v773_v10  ;;  %vm1082_vm0 = vmor %vm1080_vm7, %vm1081_vm6 }
 0xe8c   :  { %v1077_v19 = vsub.f32 1.0, %v1076_v16 }
 0xe8d   :  { %v775_v15 = vmul.f32 %v1812_v9, %v774_v11 }
 0xe8e   :  { %v1078_v4 = vmul.f32 %v1814_v13, %v1077_v19 }
 0xe8f   :  { %v776_v18 = vadd.f32 %v1812_v9, %v775_v15 }
 0xe90   :  { %v1079_v8 = vadd.f32 %v1814_v13, %v1078_v4 }
 0xe91   :  { %v780_v22 = vsel %vm779_vm3, %v1812_v9, %v776_v18 }
 0xe92   :  { %v785_v6 = vsel %vm782_vm4, %v784_v5, %v780_v22  ;;  %v1083_v27 = vsel %vm1082_vm0, %v1814_v13, %v1079_v8  ;;  %v663_v8 = vpack.c.bf16 %v2318_v47, %v2318_v47 }
 0xe93   :  { %v1088_v40 = vsel %vm1085_vm9, %v1087_v28, %v1083_v27  ;;  %v788_v31 = vmul.f32 %v785_v6, %v2380_v41  ;;  %v592_v41 = vpack.c.bf16 %v2292_v14, %v2292_v14 }
 0xe94   :  { %v1091_v37 = vmul.f32 %v1088_v40, %v2375_v35 }
 0xee9   :  { %v791_v23 = vpop.permute.xlu0 %790 }
 0xeea   :  { %v793_v24 = vmul.f32 %v791_v23, %v785_v6 }
 0xeec   :  { %795 = vrot.lane.b32.xlu2 %v793_v24, %s2068_s2 }
 0xef1   :  { %v1094_v29 = vpop.permute.xlu1 %1093 }
 0xef2   :  { %v1096_v30 = vmul.f32 %v1094_v29, %v1088_v40 }
 0xef4   :  { %1098 = vrot.lane.b32.xlu0 %v1096_v30, %s2068_s2 }
 0xf46   :  { %v796_v32 = vpop.permute.xlu2 %795 }
 0xf47   :  { %v2407_v33 = vadd.f32 %v796_v32, %v788_v31 }
 0xf49   :  { %1815 = vtanh.f32 %v2407_v33 }
 0xf4f   :  { %v1816_v34 = vpop.eup %1815 }
 0xf50   :  { %801 = vrot.lane.b32.xlu1 %v1816_v34, %s2057_s16 }
 0xf58   :  { %523 = vrot.lane.b32.xlu1 %v521_v36, %s2068_s2 }
 0xf66   :  { %v1099_v39 = vpop.permute.xlu0 %1098 }
 0xf67   :  { %v1101_v17 = vadd.f32 %v1099_v39, %v1091_v37 }
 0xf69   :  { %1817 = vtanh.f32 %v1101_v17 }
 0xf6f   :  { %v1818_v43 = vpop.eup %1817 }
 0xf70   :  { %1104 = vrot.lane.b32.xlu2 %v1818_v43, %s2057_s16 }
 0xf78   :  { %594 = vrot.lane.b32.xlu2 %v592_v41, %s2068_s2  ;;  %v734_v41 = vpack.c.bf16 %v2384_v44, %v2384_v44 }
 0xfc2   :  { %v802_v52 = vpop.permute.xlu1 %801 }
 0xfc3   :  { %v2419_v53 = vmul.f32 %v802_v52, %v785_v6 }
 0xfc5   :  { %813 = vrot.lane.b32.xlu0 %v2419_v53, %s2068_s2 }
 0xfca   :  { %v524_v45 = vpop.permute.xlu1 %523  ;;  %v1105_v54 = vpop.permute.xlu2 %1104 }
 0xfcb   :  { %526 = vst.msk [vmem:[#allocation3 + $0x8] sm:$0xf] %vm383_vm8, %v524_v45  ;;  %v1107_v35 = vmul.f32 %v1105_v54, %v1088_v40 }
 0xfcd   :  { %1110 = vrot.lane.b32.xlu0 %v1107_v35, %s2068_s2 }
 0xfd2   :  { %v595_v38 = vpop.permute.xlu2 %594 }
 0xfd3   :  { %597 = vst.msk [vmem:[#allocation3 + $0xc] sm:$0xf] %vm383_vm8, %v595_v38 }
 0xfda   :  { %v1726_v55 = vld [vmem:[#allocation3 + $0x8] sm:$0xff] }
 0xfdb   :  { %1703 = vmatmul.msk.bf16.gmra.mxu0 %vm312_vm5, %v1726_v55 }
0x1037   :  { %v814_v14 = vpop.permute.xlu0 %813 }
0x1038   :  { %1676 = vmatmul.msk.f32.vlgmr.msrb.gmra.mxu3 %vm312_vm5, %v814_v14 }
0x1039   :  { %1321 = vmatpush.msrb.mxu3 %v2325_v48 }
0x103b   :  { %1322 = vmatpush.msrb.mxu3 %v2330_v49 }
0x103d   :  { %1323 = vmatpush.msrb.mxu3 %v2337_v50 }
0x103f   :  { %v1111_v56 = vpop.permute.xlu0 %1110  ;;  %1324 = vmatpush.msrb.mxu3 %v2345_v51 }
0x1040   :  { %1709 = vmatmul.msk.f32.vlgmr.msra.gmra.mxu3 %vm312_vm5, %v1111_v56 }
0x1058   :  { %v957_v7 = vpop.f32.mrf.mxu0 }
0x1060   :  { %v959_v4 = vpop.f32.mrf.mxu0 }
0x10bb   :  { %v2433_v57 = vpop.f32.mrf.mxu3 }
0x10c3   :  { %v1131_v59 = vpop.f32.mrf.mxu3 }
0x10c4   :  { %v1134_v60 = vadd.f32 %v1131_v59, %v957_v7 }
0x10c6   :  { %v1135_v42 = vadd.f32 %v2368_v58, %v1134_v60 }
0x10c8   :  { %1819 = vtanh.f32 %v1135_v42  ;;  %v1710_v48 = vmul.f32 -1.442695, %v1135_v42 }
0x10ca   :  { %1821 = vpow2.f32 %v1710_v48 }
0x10ce   :  { %v1820_v61 = vpop.eup %1819 }
0x10cf   :  { %1158 = vrot.lane.b32.xlu1 %v1820_v61, %s2057_s16 }
0x10d0   :  { %v1822_v49 = vpop.eup %1821 }
0x10d1   :  { %v1139_v50 = vadd.f32 1.0, %v1822_v49 }
0x10d3   :  { %1823 = vrcp.f32 %v1139_v50  ;;  %v1151_v21 = vand.u32 2147483648, %v1139_v50  ;;  %vm1145_vm11 = vweird.f32 %v1139_v50  ;;  %v1149_v12 = vand.u32 2147483647, %v1139_v50 }
0x10d5   :  { %v1152_v9 = vor.u32 1.1754944e-38, %v1151_v21  ;;  %vm1150_vm13 = vcmp.eq.f32.partialorder %v1149_v12, 8.507059e+37 }
0x10d9   :  { %v1824_v62 = vpop.eup %1823 }
0x10da   :  { %v1141_v51 = vmul.f32 %v1824_v62, %v1139_v50  ;;  %vm1146_vm10 = vweird.f32 %v1824_v62 }
0x10db   :  { %vm1147_vm12 = vmor %vm1145_vm11, %vm1146_vm10 }
0x10dc   :  { %v1142_v63 = vsub.f32 1.0, %v1141_v51 }
0x10de   :  { %v1143_v0 = vmul.f32 %v1824_v62, %v1142_v63 }
0x10e0   :  { %v1144_v2 = vadd.f32 %v1824_v62, %v1143_v0 }
0x10e2   :  { %v1148_v3 = vsel %vm1147_vm12, %v1824_v62, %v1144_v2 }
0x10e3   :  { %v1153_v11 = vsel %vm1150_vm13, %v1152_v9, %v1148_v3  ;;  %v837_v3 = vadd.f32 %v2433_v57, %v2244_v46 }
0x10e4   :  { %v1156_v15 = vmul.f32 %v1153_v11, %v1101_v17 }
0x1141   :  { %v1159_v10 = vpop.permute.xlu1 %1158 }
0x1142   :  { %v1161_v13 = vmul.f32 %v1159_v10, %v1153_v11 }
0x1144   :  { %1163 = vrot.lane.b32.xlu2 %v1161_v13, %s2068_s2 }
0x119e   :  { %v1164_v16 = vpop.permute.xlu2 %1163 }
0x119f   :  { %v1166_v18 = vadd.f32 %v1164_v16, %v1156_v15 }
0x11a1   :  { %1825 = vtanh.f32 %v1166_v18 }
0x11a7   :  { %v1826_v19 = vpop.eup %1825 }
0x11a8   :  { %1169 = vrot.lane.b32.xlu0 %v1826_v19, %s2057_s16 }
0x121a   :  { %v1170_v20 = vpop.permute.xlu0 %1169 }
0x121b   :  { %v1172_v1 = vmul.f32 %v1170_v20, %v1153_v11  ;;  %v1879_v11 = vld [vmem:[#allocation4] ss:$0 sm:$0xff] }
0x121c   :  { %v838_v13 = vadd.f32 %v1879_v11, %v837_v3 }
0x121d   :  { %1175 = vrot.lane.b32.xlu1 %v1172_v1, %s2068_s2 }
0x121e   :  { %v1677_v57 = vmul.f32 -1.442695, %v838_v13 }
0x128f   :  { %v1176_v22 = vpop.permute.xlu1 %1175 }
0x1290   :  { %1711 = vmatmul.msk.f32.vlgmr.msra.gmra.mxu1 %vm312_vm5, %v1176_v22 }
0x130d   :  { %v1196_v5 = vpop.f32.mrf.mxu1 }
0x130e   :  { %v1199_v6 = vadd.f32 %v1196_v5, %v959_v4 }
0x1310   :  { %v1200_v23 = vadd.f32 %v2368_v58, %v1199_v6 }
0x1312   :  { %1827 = vtanh.f32 %v1200_v23  ;;  %v1712_v25 = vmul.f32 -1.442695, %v1200_v23 }
0x1314   :  { %1829 = vpow2.f32 %v1712_v25 }
0x1318   :  { %v1828_v24 = vpop.eup %1827 }
0x1319   :  { %1223 = vrot.lane.b32.xlu2 %v1828_v24, %s2057_s16 }
0x131a   :  { %v1830_v26 = vpop.eup %1829 }
0x131b   :  { %v1204_v27 = vadd.f32 1.0, %v1830_v26 }
0x131d   :  { %1831 = vrcp.f32 %v1204_v27  ;;  %v1216_v32 = vand.u32 2147483648, %v1204_v27  ;;  %vm1210_vm15 = vweird.f32 %v1204_v27  ;;  %v1214_v34 = vand.u32 2147483647, %v1204_v27 }
0x131f   :  { %v1217_v37 = vor.u32 1.1754944e-38, %v1216_v32  ;;  %vm1215_vm2 = vcmp.eq.f32.partialorder %v1214_v34, 8.507059e+37 }
0x1321   :  { %665 = vrot.lane.b32.xlu2 %v663_v8, %s2068_s2 }
0x1323   :  { %v1832_v28 = vpop.eup %1831 }
0x1324   :  { %v1206_v29 = vmul.f32 %v1832_v28, %v1204_v27  ;;  %vm1211_vm14 = vweird.f32 %v1832_v28 }
0x1325   :  { %vm1212_vm1 = vmor %vm1210_vm15, %vm1211_vm14 }
0x1326   :  { %v1207_v40 = vsub.f32 1.0, %v1206_v29 }
0x1328   :  { %v1208_v30 = vmul.f32 %v1832_v28, %v1207_v40 }
0x132a   :  { %v1209_v31 = vadd.f32 %v1832_v28, %v1208_v30 }
0x132c   :  { %v1213_v36 = vsel %vm1212_vm1, %v1832_v28, %v1209_v31 }
0x132d   :  { %v1218_v39 = vsel %vm1215_vm2, %v1217_v37, %v1213_v36 }
0x132e   :  { %v1221_v52 = vmul.f32 %v1218_v39, %v1166_v18 }
0x1373   :  { %v1224_v47 = vpop.permute.xlu2 %1223 }
0x1374   :  { %v1226_v17 = vmul.f32 %v1224_v47, %v1218_v39 }
0x1376   :  { %1228 = vrot.lane.b32.xlu0 %v1226_v17, %s2068_s2 }
0x137b   :  { %v666_v43 = vpop.permute.xlu2 %665 }
0x137c   :  { %668 = vst.msk [vmem:[#allocation3 + $0x10] sm:$0xf] %vm383_vm8, %v666_v43 }
0x137e   :  { %736 = vrot.lane.b32.xlu0 %v734_v41, %s2068_s2 }
0x13e8   :  { %v1229_v45 = vpop.permute.xlu0 %1228 }
0x13e9   :  { %v1231_v54 = vadd.f32 %v1229_v45, %v1221_v52 }
0x13eb   :  { %1833 = vtanh.f32 %v1231_v54 }
0x13f0   :  { %v737_v35 = vpop.permute.xlu0 %736 }
0x13f1   :  { %v1834_v38 = vpop.eup %1833  ;;  %739 = vst.msk [vmem:[#allocation3 + $0x14] sm:$0xf] %vm383_vm8, %v737_v35 }
0x13f2   :  { %1234 = vrot.lane.b32.xlu1 %v1834_v38, %s2057_s16 }
0x13f8   :  { %v1727_v55 = vld [vmem:[#allocation3 + $0x10] sm:$0xff] }
0x13f9   :  { %1704 = vmatmul.msk.bf16.gmra.mxu0 %vm312_vm5, %v1727_v55 }
0x1464   :  { %v1235_v14 = vpop.permute.xlu1 %1234 }
0x1465   :  { %v1237_v56 = vmul.f32 %v1235_v14, %v1218_v39 }
0x1467   :  { %1240 = vrot.lane.b32.xlu1 %v1237_v56, %s2068_s2 }
0x1476   :  { %v962_v7 = vpop.f32.mrf.mxu0 }
0x147e   :  { %v964_v37 = vpop.f32.mrf.mxu0 }
0x14d9   :  { %v1241_v44 = vpop.permute.xlu1 %1240 }
0x14da   :  { %1713 = vmatmul.msk.f32.vlgmr.msrb.gmra.mxu2 %vm312_vm5, %v1241_v44 }
0x155d   :  { %v1261_v59 = vpop.f32.mrf.mxu2 }
0x155e   :  { %v1264_v60 = vadd.f32 %v1261_v59, %v962_v7 }
0x1560   :  { %v1265_v42 = vadd.f32 %v2368_v58, %v1264_v60 }
0x1562   :  { %1835 = vtanh.f32 %v1265_v42  ;;  %v1714_v48 = vmul.f32 -1.442695, %v1265_v42 }
0x1564   :  { %1837 = vpow2.f32 %v1714_v48 }
0x1568   :  { %v1836_v61 = vpop.eup %1835 }
0x1569   :  { %1288 = vrot.lane.b32.xlu2 %v1836_v61, %s2057_s16 }
0x156a   :  { %v1838_v49 = vpop.eup %1837 }
0x156b   :  { %v1269_v50 = vadd.f32 1.0, %v1838_v49 }
0x156d   :  { %1839 = vrcp.f32 %v1269_v50  ;;  %v1281_v21 = vand.u32 2147483648, %v1269_v50  ;;  %vm1275_vm4 = vweird.f32 %v1269_v50  ;;  %v1279_v12 = vand.u32 2147483647, %v1269_v50 }
0x156e   :  { %1841 = vtanh.f32 %v838_v13 }
0x156f   :  { %v1282_v10 = vor.u32 1.1754944e-38, %v1281_v21  ;;  %vm1280_vm7 = vcmp.eq.f32.partialorder %v1279_v12, 8.507059e+37 }
0x1573   :  { %v1840_v62 = vpop.eup %1839 }
0x1574   :  { %v1271_v51 = vmul.f32 %v1840_v62, %v1269_v50  ;;  %vm1276_vm3 = vweird.f32 %v1840_v62  ;;  %v1842_v19 = vpop.eup %1841 }
0x1575   :  { %vm1277_vm6 = vmor %vm1275_vm4, %vm1276_vm3 }
0x1576   :  { %v1272_v63 = vsub.f32 1.0, %v1271_v51  ;;  %v805_v51 = vpack.c.bf16 %v2419_v53, %v2419_v53 }
0x1578   :  { %v1273_v0 = vmul.f32 %v1840_v62, %v1272_v63 }
0x157a   :  { %v1274_v2 = vadd.f32 %v1840_v62, %v1273_v0 }
0x157c   :  { %v1278_v9 = vsel %vm1277_vm6, %v1840_v62, %v1274_v2 }
0x157d   :  { %v1283_v16 = vsel %vm1280_vm7, %v1282_v10, %v1278_v9 }
0x157e   :  { %v1286_v20 = vmul.f32 %v1283_v16, %v1231_v54 }
0x15c3   :  { %v1289_v15 = vpop.permute.xlu2 %1288 }
0x15c4   :  { %v1291_v18 = vmul.f32 %v1289_v15, %v1283_v16 }
0x15c6   :  { %1293 = vrot.lane.b32.xlu0 %v1291_v18, %s2068_s2 }
0x15ce   :  { %861 = vrot.lane.b32.xlu0 %v1842_v19, %s2057_s16 }
0x1638   :  { %v1294_v1 = vpop.permute.xlu0 %1293 }
0x1639   :  { %v2462_v22 = vadd.f32 %v1294_v1, %v1286_v20 }
0x163b   :  { %1843 = vtanh.f32 %v2462_v22 }
0x163c   :  { %1845 = vpow2.f32 %v1677_v57 }
0x1640   :  { %v862_v31 = vpop.permute.xlu0 %861 }
0x1641   :  { %v1844_v46 = vpop.eup %1843 }
0x1642   :  { %1299 = vrot.lane.b32.xlu1 %v1844_v46, %s2057_s16  ;;  %v1846_v4 = vpop.eup %1845 }
0x1643   :  { %v842_v5 = vadd.f32 1.0, %v1846_v4 }
0x1645   :  { %1847 = vrcp.f32 %v842_v5  ;;  %v854_v28 = vand.u32 2147483648, %v842_v5  ;;  %vm848_vm9 = vweird.f32 %v842_v5  ;;  %v852_v29 = vand.u32 2147483647, %v842_v5 }
0x1647   :  { %v855_v30 = vor.u32 1.1754944e-38, %v854_v28  ;;  %vm853_vm11 = vcmp.eq.f32.partialorder %v852_v29, 8.507059e+37 }
0x164b   :  { %v1848_v6 = vpop.eup %1847 }
0x164c   :  { %v844_v23 = vmul.f32 %v1848_v6, %v842_v5  ;;  %vm849_vm0 = vweird.f32 %v1848_v6 }
0x164d   :  { %vm850_vm10 = vmor %vm848_vm9, %vm849_vm0 }
0x164e   :  { %v845_v24 = vsub.f32 1.0, %v844_v23 }
0x1650   :  { %v846_v8 = vmul.f32 %v1848_v6, %v845_v24 }
0x1652   :  { %v847_v26 = vadd.f32 %v1848_v6, %v846_v8 }
0x1654   :  { %v851_v40 = vsel %vm850_vm10, %v1848_v6, %v847_v26 }
0x1655   :  { %v856_v32 = vsel %vm853_vm11, %v855_v30, %v851_v40 }
0x1656   :  { %v864_v34 = vmul.f32 %v862_v31, %v856_v32  ;;  %v859_v41 = vmul.f32 %v856_v32, %v2407_v33 }
0x16b4   :  { %v1300_v25 = vpop.permute.xlu1 %1299 }
0x16b5   :  { %v1302_v27 = vmul.f32 %v1300_v25, %v1283_v16 }
0x16b7   :  { %1305 = vrot.lane.b32.xlu2 %v1302_v27, %s2068_s2 }
0x16bf   :  { %866 = vrot.lane.b32.xlu2 %v864_v34, %s2068_s2 }
0x1711   :  { %v1306_v36 = vpop.permute.xlu2 %1305 }
0x1712   :  { %1715 = vmatmul.msk.f32.vlgmr.msrb.gmra.mxu3 %vm312_vm5, %v1306_v36 }
0x1719   :  { %v867_v43 = vpop.permute.xlu2 %866 }
0x171a   :  { %v869_v52 = vadd.f32 %v867_v43, %v859_v41 }
0x1795   :  { %v1326_v47 = vpop.f32.mrf.mxu3 }
0x1796   :  { %v1329_v39 = vadd.f32 %v1326_v47, %v964_v37 }
0x1798   :  { %v1330_v17 = vadd.f32 %v2368_v58, %v1329_v39 }
0x179a   :  { %1849 = vtanh.f32 %v1330_v17  ;;  %v1716_v35 = vmul.f32 -1.442695, %v1330_v17 }
0x179b   :  { %1851 = vtanh.f32 %v869_v52 }
0x179c   :  { %1853 = vpow2.f32 %v1716_v35 }
0x17a0   :  { %v1850_v45 = vpop.eup %1849 }
0x17a1   :  { %1353 = vrot.lane.b32.xlu1 %v1850_v45, %s2057_s16  ;;  %v1852_v54 = vpop.eup %1851 }
0x17a2   :  { %v1854_v38 = vpop.eup %1853 }
0x17a3   :  { %v1334_v55 = vadd.f32 1.0, %v1854_v38 }
0x17a5   :  { %1855 = vrcp.f32 %v1334_v55  ;;  %v1346_v33 = vand.u32 2147483648, %v1334_v55  ;;  %vm1340_vm13 = vweird.f32 %v1334_v55  ;;  %v1344_v60 = vand.u32 2147483647, %v1334_v55 }
0x17a7   :  { %v1347_v61 = vor.u32 1.1754944e-38, %v1346_v33  ;;  %vm1345_vm15 = vcmp.eq.f32.partialorder %v1344_v60, 8.507059e+37 }
0x17a9   :  { %872 = vrot.lane.b32.xlu1 %v1852_v54, %s2057_s16 }
0x17ab   :  { %v1856_v14 = vpop.eup %1855 }
0x17ac   :  { %v1336_v56 = vmul.f32 %v1856_v14, %v1334_v55  ;;  %vm1341_vm12 = vweird.f32 %v1856_v14 }
0x17ad   :  { %vm1342_vm14 = vmor %vm1340_vm13, %vm1341_vm12 }
0x17ae   :  { %v1337_v44 = vsub.f32 1.0, %v1336_v56 }
0x17b0   :  { %v1338_v7 = vmul.f32 %v1856_v14, %v1337_v44 }
0x17b2   :  { %v1339_v59 = vadd.f32 %v1856_v14, %v1338_v7 }
0x17b4   :  { %v1343_v42 = vsel %vm1342_vm14, %v1856_v14, %v1339_v59 }
0x17b5   :  { %v1348_v49 = vsel %vm1345_vm15, %v1347_v61, %v1343_v42 }
0x17b6   :  { %v1351_v2 = vmul.f32 %v1348_v49, %v2462_v22 }
0x1813   :  { %v1354_v48 = vpop.permute.xlu1 %1353 }
0x1814   :  { %v1356_v50 = vmul.f32 %v1354_v48, %v1348_v49 }
0x1816   :  { %1358 = vrot.lane.b32.xlu0 %v1356_v50, %s2068_s2 }
0x181b   :  { %v873_v62 = vpop.permute.xlu1 %872 }
0x181c   :  { %v875_v63 = vmul.f32 %v873_v62, %v856_v32 }
0x181e   :  { %v876_v0 = vpack.c.bf16 %v875_v63, %v875_v63  ;;  %807 = vrot.lane.b32.xlu0 %v805_v51, %s2068_s2  ;;  %v1501_v51 = vld [vmem:[%s2519_s7 + $0x18] sm:$0xff]  ;;  %v1500_v63 = vld [vmem:[%s2519_s7 + $0x10] sm:$0xff] }
0x181f   :  { %1523 = vmatpush.msra.mxu3 %v1501_v51 }
0x1820   :  { %878 = vrot.lane.b32.xlu1 %v876_v0, %s2068_s2  ;;  %v1499_v0 = vld [vmem:[%s2519_s7 + $0x8] sm:$0xff] }
0x1821   :  { %1524 = vmatpush.msra.mxu3 %v1500_v63 }
0x1823   :  { %1525 = vmatpush.msra.mxu3 %v1499_v0 }
0x1888   :  { %v1359_v21 = vpop.permute.xlu0 %1358 }
0x1889   :  { %v1361_v12 = vadd.f32 %v1359_v21, %v1351_v2  ;;  %v1498_v2 = vld [vmem:[%s2519_s7] sm:$0xff] }
0x188a   :  { %1526 = vmatpush.msra.mxu3 %v1498_v2 }
0x188b   :  { %1857 = vtanh.f32 %v1361_v12 }
0x1890   :  { %v808_v3 = vpop.permute.xlu0 %807 }
0x1891   :  { %v1858_v9 = vpop.eup %1857  ;;  %810 = vst.msk [vmem:[#allocation3 + $0x18] sm:$0xf] %vm383_vm8, %v808_v3  ;;  %v1547_v3 = vld [vmem:[#allocation9 + $0x78] sm:$0xff] }
0x1892   :  { %1364 = vrot.lane.b32.xlu2 %v1858_v9, %s2057_s16  ;;  %v879_v10 = vpop.permute.xlu1 %878  ;;  %v1546_v9 = vld [vmem:[#allocation9 + $0x70] sm:$0xff]  ;;  %1552 = vmatpush.msra.mxu1 %v1547_v3 }
0x1893   :  { %881 = vst.msk [vmem:[#allocation3 + $0x1c] sm:$0xf] %vm383_vm8, %v879_v10  ;;  %v1545_v10 = vld [vmem:[#allocation9 + $0x68] sm:$0xff] }
0x1894   :  { %1553 = vmatpush.msra.mxu1 %v1546_v9 }
0x1896   :  { %1554 = vmatpush.msra.mxu1 %v1545_v10 }
0x189a   :  { %v1728_v53 = vld [vmem:[#allocation3 + $0x18] sm:$0xff] }
0x189b   :  { %1705 = vmatmul.msk.bf16.gmra.mxu0 %vm312_vm5, %v1728_v53  ;;  %v1544_v53 = vld [vmem:[#allocation9 + $0x60] sm:$0xff] }
0x189c   :  { %1555 = vmatpush.msra.mxu1 %v1544_v53 }
0x18ec   :  { %v1365_v11 = vpop.permute.xlu2 %1364 }
0x18ed   :  { %v1367_v13 = vmul.f32 %v1365_v11, %v1348_v49  ;;  %v1543_v11 = vld [vmem:[#allocation9 + $0x58] sm:$0xff] }
0x18ee   :  { %1556 = vmatpush.msra.mxu1 %v1543_v11 }
0x18ef   :  { %1370 = vrot.lane.b32.xlu2 %v1367_v13, %s2068_s2  ;;  %v1542_v13 = vld [vmem:[#allocation9 + $0x50] sm:$0xff] }
0x18f0   :  { %1557 = vmatpush.msra.mxu1 %v1542_v13 }
0x1918   :  { %v967_v16 = vpop.f32.mrf.mxu0 }
0x1920   :  { %v969_v39 = vpop.f32.mrf.mxu0 }
0x1949   :  { %v1371_v15 = vpop.permute.xlu2 %1370 }
0x194a   :  { %1717 = vmatmul.msk.f32.vlgmr.msrb.gmra.mxu1 %vm312_vm5, %v1371_v15  ;;  %v1541_v15 = vld [vmem:[#allocation9 + $0x48] sm:$0xff] }
0x194b   :  { %1558 = vmatpush.msra.mxu1 %v1541_v15 }
0x19c7   :  { %v1391_v18 = vpop.f32.mrf.mxu1 }
0x19c8   :  { %v1394_v19 = vadd.f32 %v1391_v18, %v967_v16  ;;  %v1540_v16 = vld [vmem:[#allocation9 + $0x40] sm:$0xff]  ;;  %v1539_v18 = vld [vmem:[#allocation9 + $0x38] sm:$0xff] }
0x19c9   :  { %1559 = vmatpush.msra.mxu1 %v1540_v16 }
0x19ca   :  { %v1395_v20 = vadd.f32 %v2368_v58, %v1394_v19  ;;  %v1538_v19 = vld [vmem:[#allocation9 + $0x30] sm:$0xff] }
0x19cb   :  { %1560 = vmatpush.msra.mxu1 %v1539_v18 }
0x19cc   :  { %1859 = vtanh.f32 %v1395_v20  ;;  %v1718_v22 = vmul.f32 -1.442695, %v1395_v20  ;;  %v1537_v20 = vld [vmem:[#allocation9 + $0x28] sm:$0xff] }
0x19cd   :  { %1561 = vmatpush.msra.mxu1 %v1538_v19 }
0x19ce   :  { %1861 = vpow2.f32 %v1718_v22  ;;  %v1535_v22 = vld [vmem:[#allocation9 + $0x18] sm:$0xff] }
0x19cf   :  { %1562 = vmatpush.msra.mxu1 %v1537_v20 }
0x19d2   :  { %v1860_v1 = vpop.eup %1859 }
0x19d3   :  { %1418 = vrot.lane.b32.xlu0 %v1860_v1, %s2057_s16  ;;  %v1536_v1 = vld [vmem:[#allocation9 + $0x20] sm:$0xff] }
0x19d4   :  { %v1862_v46 = vpop.eup %1861  ;;  %1563 = vmatpush.msra.mxu1 %v1536_v1 }
0x19d5   :  { %v1399_v57 = vadd.f32 1.0, %v1862_v46 }
0x19d6   :  { %1564 = vmatpush.msra.mxu1 %v1535_v22 }
0x19d7   :  { %1863 = vrcp.f32 %v1399_v57  ;;  %v1411_v8 = vand.u32 2147483648, %v1399_v57  ;;  %vm1405_vm1 = vweird.f32 %v1399_v57  ;;  %v1409_v25 = vand.u32 2147483647, %v1399_v57 }
0x19d9   :  { %v1412_v27 = vor.u32 1.1754944e-38, %v1411_v8  ;;  %vm1410_vm3 = vcmp.eq.f32.partialorder %v1409_v25, 8.507059e+37  ;;  %v1585_v8 = vld [vmem:[#allocation12 + $0x60] sm:$0xff]  ;;  %v1584_v25 = vld [vmem:[#allocation12 + $0x58] sm:$0xff] }
0x19dd   :  { %v1864_v4 = vpop.eup %1863 }
0x19de   :  { %v1401_v5 = vmul.f32 %v1864_v4, %v1399_v57  ;;  %vm1406_vm8 = vweird.f32 %v1864_v4  ;;  %v1534_v57 = vld [vmem:[#allocation9 + $0x10] sm:$0xff] }
0x19df   :  { %vm1407_vm2 = vmor %vm1405_vm1, %vm1406_vm8  ;;  %1565 = vmatpush.msra.mxu1 %v1534_v57 }
0x19e0   :  { %v1402_v6 = vsub.f32 1.0, %v1401_v5  ;;  %v1532_v5 = vld [vmem:[#allocation9] sm:$0xff] }
0x19e2   :  { %v1403_v23 = vmul.f32 %v1864_v4, %v1402_v6  ;;  %v1588_v6 = vld [vmem:[#allocation12 + $0x78] sm:$0xff] }
0x19e3   :  { %1593 = vmatpush.msrb.mxu2 %v1588_v6 }
0x19e4   :  { %v1404_v24 = vadd.f32 %v1864_v4, %v1403_v23  ;;  %v1587_v23 = vld [vmem:[#allocation12 + $0x70] sm:$0xff] }
0x19e5   :  { %1594 = vmatpush.msrb.mxu2 %v1587_v23 }
0x19e6   :  { %v1408_v26 = vsel %vm1407_vm2, %v1864_v4, %v1404_v24  ;;  %v1533_v4 = vld [vmem:[#allocation9 + $0x8] sm:$0xff] }
0x19e7   :  { %v1413_v29 = vsel %vm1410_vm3, %v1412_v27, %v1408_v26  ;;  %1566 = vmatpush.msra.mxu1 %v1533_v4  ;;  %v1586_v24 = vld [vmem:[#allocation12 + $0x68] sm:$0xff]  ;;  %v1583_v26 = vld [vmem:[#allocation12 + $0x50] sm:$0xff] }
0x19e8   :  { %v1416_v30 = vmul.f32 %v1413_v29, %v1361_v12  ;;  %1595 = vmatpush.msrb.mxu2 %v1586_v24  ;;  %v1582_v27 = vld [vmem:[#allocation12 + $0x48] sm:$0xff] }
0x19e9   :  { %1567 = vmatpush.msra.mxu1 %v1532_v5 }
0x19ea   :  { %1596 = vmatpush.msrb.mxu2 %v1585_v8 }
0x19ec   :  { %1597 = vmatpush.msrb.mxu2 %v1584_v25 }
0x19ee   :  { %1598 = vmatpush.msrb.mxu2 %v1583_v26 }
0x19f0   :  { %1599 = vmatpush.msrb.mxu2 %v1582_v27 }
0x1a45   :  { %v1419_v28 = vpop.permute.xlu0 %1418 }
0x1a46   :  { %v1421_v40 = vmul.f32 %v1419_v28, %v1413_v29  ;;  %v1581_v28 = vld [vmem:[#allocation12 + $0x40] sm:$0xff] }
0x1a47   :  { %1600 = vmatpush.msrb.mxu2 %v1581_v28 }
0x1a48   :  { %1423 = vrot.lane.b32.xlu1 %v1421_v40, %s2068_s2  ;;  %v1579_v40 = vld [vmem:[#allocation12 + $0x30] sm:$0xff] }
0x1aba   :  { %v1424_v31 = vpop.permute.xlu1 %1423 }
0x1abb   :  { %v1426_v32 = vadd.f32 %v1424_v31, %v1416_v30  ;;  %v1578_v30 = vld [vmem:[#allocation12 + $0x28] sm:$0xff]  ;;  %v1577_v31 = vld [vmem:[#allocation12 + $0x20] sm:$0xff] }
0x1abd   :  { %1865 = vtanh.f32 %v1426_v32 }
0x1ac3   :  { %v1866_v34 = vpop.eup %1865 }
0x1ac4   :  { %1429 = vrot.lane.b32.xlu2 %v1866_v34, %s2057_s16  ;;  %v1744_v34 = vld [vmem:[#allocation8] ss:$0 sm:$0xff] }
0x1b1e   :  { %v1430_v36 = vpop.permute.xlu2 %1429 }
0x1b1f   :  { %v1432_v37 = vmul.f32 %v1430_v36, %v1413_v29  ;;  %v1580_v29 = vld [vmem:[#allocation12 + $0x38] sm:$0xff] }
0x1b20   :  { %1601 = vmatpush.msrb.mxu2 %v1580_v29 }
0x1b21   :  { %1435 = vrot.lane.b32.xlu0 %v1432_v37, %s2068_s2 }
0x1b22   :  { %1602 = vmatpush.msrb.mxu2 %v1579_v40 }
0x1b24   :  { %1603 = vmatpush.msrb.mxu2 %v1578_v30 }
0x1b26   :  { %1604 = vmatpush.msrb.mxu2 %v1577_v31 }
0x1b93   :  { %v1436_v47 = vpop.permute.xlu0 %1435 }
0x1b94   :  { %1719 = vmatmul.msk.f32.vlgmr.msra.gmra.mxu2 %vm312_vm5, %v1436_v47 }
0x1c17   :  { %v1456_v17 = vpop.f32.mrf.mxu2 }
0x1c18   :  { %v1459_v43 = vadd.f32 %v1456_v17, %v969_v39  ;;  %v1575_v39 = vld [vmem:[#allocation12 + $0x10] sm:$0xff]  ;;  %v1574_v17 = vld [vmem:[#allocation12 + $0x8] sm:$0xff] }
0x1c1a   :  { %v1460_v41 = vadd.f32 %v2368_v58, %v1459_v43  ;;  %v1573_v43 = vld [vmem:[#allocation12] sm:$0xff] }
0x1c1c   :  { %1867 = vtanh.f32 %v1460_v41  ;;  %v1720_v45 = vmul.f32 -1.442695, %v1460_v41  ;;  %v1745_v41 = vld [vmem:[#allocation11] ss:$0 sm:$0xff] }
0x1c1e   :  { %1869 = vpow2.f32 %v1720_v45 }
0x1c22   :  { %v1868_v52 = vpop.eup %1867 }
0x1c23   :  { %1483 = vrot.lane.b32.xlu1 %v1868_v52, %s2057_s16 }
0x1c24   :  { %v1870_v54 = vpop.eup %1869 }
0x1c25   :  { %v1464_v35 = vadd.f32 1.0, %v1870_v54 }
0x1c27   :  { %1871 = vrcp.f32 %v1464_v35  ;;  %v1476_v7 = vand.u32 2147483648, %v1464_v35  ;;  %vm1470_vm6 = vweird.f32 %v1464_v35  ;;  %v1474_v59 = vand.u32 2147483647, %v1464_v35 }
0x1c29   :  { %v1477_v33 = vor.u32 1.1754944e-38, %v1476_v7  ;;  %vm1475_vm0 = vcmp.eq.f32.partialorder %v1474_v59, 8.507059e+37 }
0x1c2d   :  { %v1872_v38 = vpop.eup %1871 }
0x1c2e   :  { %v1466_v55 = vmul.f32 %v1872_v38, %v1464_v35  ;;  %vm1471_vm4 = vweird.f32 %v1872_v38  ;;  %v1746_v35 = vld [vmem:[#allocation14] ss:$0 sm:$0xff] }
0x1c2f   :  { %vm1472_vm7 = vmor %vm1470_vm6, %vm1471_vm4 }
0x1c30   :  { %v1467_v14 = vsub.f32 1.0, %v1466_v55 }
0x1c32   :  { %v1468_v56 = vmul.f32 %v1872_v38, %v1467_v14 }
0x1c34   :  { %v1469_v44 = vadd.f32 %v1872_v38, %v1468_v56 }
0x1c36   :  { %v1473_v58 = vsel %vm1472_vm7, %v1872_v38, %v1469_v44 }
0x1c37   :  { %v1478_v42 = vsel %vm1475_vm0, %v1477_v33, %v1473_v58 }
0x1c38   :  { %v1481_v48 = vmul.f32 %v1478_v42, %v1426_v32  ;;  %v1576_v32 = vld [vmem:[#allocation12 + $0x18] sm:$0xff] }
0x1c39   :  { %1605 = vmatpush.msrb.mxu2 %v1576_v32 }
0x1c3b   :  { %1606 = vmatpush.msrb.mxu2 %v1575_v39 }
0x1c3d   :  { %1607 = vmatpush.msrb.mxu2 %v1574_v17 }
0x1c3f   :  { %1608 = vmatpush.msrb.mxu2 %v1573_v43 }
0x1c95   :  { %v1484_v60 = vpop.permute.xlu1 %1483 }
0x1c96   :  { %v1486_v61 = vmul.f32 %v1484_v60, %v1478_v42 }
0x1c98   :  { %1488 = vrot.lane.b32.xlu2 %v1486_v61, %s2068_s2 }
0x1cf2   :  { %v1489_v49 = vpop.permute.xlu2 %1488 }
0x1cf3   :  { %v1491_v50 = vadd.f32 %v1489_v49, %v1481_v48 }
0x1cf5   :  { %1873 = vtanh.f32 %v1491_v50 }
0x1cfb   :  { %v1874_v62 = vpop.eup %1873 }
0x1cfc   :  { %1494 = vrot.lane.b32.xlu0 %v1874_v62, %s2057_s16 }
0x1d6e   :  { %v1495_v21 = vpop.permute.xlu0 %1494 }
0x1d6f   :  { %v1497_v12 = vmul.f32 %v1495_v21, %v1478_v42 }
0x1d71   :  { %1507 = vrot.lane.b32.xlu1 %v1497_v12, %s2068_s2 }
0x1de3   :  { %v1508_v46 = vpop.permute.xlu1 %1507 }
0x1de4   :  { %1721 = vmatmul.msk.f32.vlgmr.msra.gmra.mxu3 %vm312_vm5, %v1508_v46 }
0x1e67   :  { %v1528_v36 = vpop.f32.mrf.mxu3 }
0x1e68   :  { %v1529_v37 = vadd.f32 %v1744_v34, %v1528_v36 }
0x1e6a   :  { %v1531_v47 = vmax.f32 %v1529_v37, 0.0 }
0x1e6c   :  { %1568 = vmatmul.f32.vlgmr.msra.gmra.mxu1 %v1531_v47 }
0x1ee9   :  { %v1569_v52 = vpop.f32.mrf.mxu1 }
0x1eea   :  { %v1570_v45 = vadd.f32 %v1745_v41, %v1569_v52 }
0x1eec   :  { %v1572_v54 = vmax.f32 %v1570_v45, 0.0 }
0x1eee   :  { %1609 = vmatmul.f32.vlgmr.msrb.gmra.mxu2 %v1572_v54 }
0x1f71   :  { %v1610_v38 = vpop.f32.mrf.mxu2 }
0x1f72   :  { %v1611_v55 = vadd.f32 %v1746_v35, %v1610_v38 }
0x1f74   :  { %1613 = vmax.xlane.f32.xlu2 %v1611_v55 }
0x1fe7   :  { %v1614_v14 = vpop.xlane.xlu2 %1613 }
0x1fe8   :  { %v1615_v56 = vsub.f32 %v1611_v55, %v1614_v14 }
0x1fea   :  { %v1616_v44 = vmul.f32 1.442695, %v1615_v56 }
0x1fec   :  { %1875 = vpow2.f32 %v1616_v44 }
0x1ff2   :  { %v1876_v7 = vpop.eup %1875 }
0x1ff3   :  { %1618 = vadd.xlane.f32.xlu0 %v1876_v7 }
0x2066   :  { %v1619_v59 = vpop.xlane.xlu0 %1618 }
0x2067   :  { %1877 = vrcp.f32 %v1619_v59  ;;  %v1631_v42 = vand.u32 2147483648, %v1619_v59  ;;  %v1629_v48 = vand.u32 2147483647, %v1619_v59  ;;  %vm1625_vm9 = vweird.f32 %v1619_v59 }
0x2069   :  { %v1632_v50 = vor.u32 1.1754944e-38, %v1631_v42  ;;  %vm1630_vm11 = vcmp.eq.f32.partialorder %v1629_v48, 8.507059e+37 }
0x206d   :  { %v1878_v58 = vpop.eup %1877 }
0x206e   :  { %v1621_v33 = vmul.f32 %v1878_v58, %v1619_v59  ;;  %vm1626_vm5 = vweird.f32 %v1878_v58 }
0x206f   :  { %vm1627_vm10 = vmor %vm1625_vm9, %vm1626_vm5 }
0x2070   :  { %v1622_v60 = vsub.f32 1.0, %v1621_v33 }
0x2072   :  { %v1623_v61 = vmul.f32 %v1878_v58, %v1622_v60 }
0x2074   :  { %v1624_v49 = vadd.f32 %v1878_v58, %v1623_v61 }
0x2076   :  { %v1628_v62 = vsel %vm1627_vm10, %v1878_v58, %v1624_v49 }
0x2077   :  { %v1633_v51 = vsel %vm1630_vm11, %v1632_v50, %v1628_v62 }
0x2078   :  { %v1634_v63 = vmul.f32 %v1876_v7, %v1633_v51 }
0x207a   :  { %1635 = vst [vmem:[%s2525_s13] sm:$0xff] %v1634_v63 }
0x207b   :  { %1640 = vsyncpa [#allocation5], 1 }
0x207c   :  { %1641 = vsyncpa [#allocation7], 1 }
0x207d   :  { %1642 = vsyncpa [#allocation10], 1 }
0x207e   :  { %1643 = vsyncpa [#allocation13], 1 }

</bundles_post_ra>
